<compile_context>
chip_gen: v7x
topology: tpu7x:2x2x1
jax: 0.10.0
libtpu: 0.0.40
codegen_flags: <defaults>
</compile_context>

<pallas_src>
import functools
import math

import jax
import jax.numpy as jnp
from jax.experimental import pallas as pl
from jax.experimental.pallas import tpu as pltpu


_VMEM_LIMIT = 48 * 1024 * 1024  # safe on v5e/v6e (128 MiB) and v7x (64 MiB)


# ----------------------------- Pallas kernels ------------------------------

def _ln_f32(x, g, b):
    """LayerNorm with f32 statistics. x: (M, D); g, b: (1, D)."""
    mean = jnp.mean(x, axis=-1, keepdims=True)
    var = jnp.mean(jnp.square(x - mean), axis=-1, keepdims=True)
    return (x - mean) * jax.lax.rsqrt(var + 1e-5) * g + b


def _attn_block_kernel(x_ref, g1_ref, b1_ref, wqkv_ref, bqkv_ref,
                       wout_ref, bout_ref, mask_ref, o_ref,
                       *, n_heads, scale, compute_dtype):
    """Fused LN1 + QKV proj + MHSA + out-proj + residual for one batch row."""
    x = x_ref[0].astype(jnp.float32)                      # (L, D)
    L, D = x.shape
    hd = D // n_heads

    # --- LN1 prologue (f32) ---
    y = _ln_f32(x, g1_ref[...], b1_ref[...])

    # --- fused QKV projection (MXU operands in compute_dtype, f32 accum) ---
    qkv = jnp.dot(y.astype(compute_dtype), wqkv_ref[...],
                  preferred_element_type=jnp.float32) + bqkv_ref[...]   # (L, 3D)

    q = qkv[:, 0 * D:1 * D].reshape(L, n_heads, hd)
    k = qkv[:, 1 * D:2 * D].reshape(L, n_heads, hd)
    v = qkv[:, 2 * D:3 * D].reshape(L, n_heads, hd)

    # --- all heads in one batched dot_general; no explicit K transpose ---
    s = jnp.einsum("qhd,khd->hqk", q.astype(compute_dtype),
                   k.astype(compute_dtype),
                   preferred_element_type=jnp.float32)    # (H, L, L)
    s = s * scale + mask_ref[...][None, :, :]

    # --- softmax in f32 ---
    s = s - jnp.max(s, axis=-1, keepdims=True)
    p = jnp.exp(s)
    p = p / jnp.sum(p, axis=-1, keepdims=True)

    o = jnp.einsum("hqk,khd->qhd", p.astype(compute_dtype),
                   v.astype(compute_dtype),
                   preferred_element_type=jnp.float32)    # (L, H, hd)
    o = o.reshape(L, D)

    # --- out-proj + residual epilogue ---
    attn = jnp.dot(o.astype(compute_dtype), wout_ref[...],
                   preferred_element_type=jnp.float32) + bout_ref[...]
    o_ref[0] = (x + attn).astype(o_ref.dtype)


def _mlp_block_kernel(x_ref, g2_ref, b2_ref, wfc_ref, bfc_ref,
                      wproj_ref, bproj_ref, o_ref, *, compute_dtype):
    """Fused LN2 + FC + QuickGELU + proj + residual for one row-tile."""
    x = x_ref[...].astype(jnp.float32)                    # (tm, D)
    y = _ln_f32(x, g2_ref[...], b2_ref[...])

    h = jnp.dot(y.astype(compute_dtype), wfc_ref[...],
                preferred_element_type=jnp.float32) + bfc_ref[...]      # (tm, 4D)
    h = h * jax.nn.sigmoid(1.702 * h)                     # QuickGELU (f32, VPU/EUP)

    out = jnp.dot(h.astype(compute_dtype), wproj_ref[...],
                  preferred_element_type=jnp.float32) + bproj_ref[...]
    o_ref[...] = (x + out).astype(o_ref.dtype)


def _final_kernel(eot_ref, x_ref, g_ref, b_ref, proj_ref, o_ref,
                  *, compute_dtype):
    """EOT-row gather (scalar-prefetched index) + ln_final + text_projection."""
    b = pl.program_id(0)
    idx = eot_ref[b]
    row = x_ref[0, pl.ds(idx, 1), :].astype(jnp.float32)  # (1, D)
    y = _ln_f32(row, g_ref[...], b_ref[...])
    out = jnp.dot(y.astype(compute_dtype), proj_ref[...],
                  preferred_element_type=jnp.float32)     # (1, E)
    o_ref[...] = out[None].astype(o_ref.dtype)            # (1, 1, E)


# ------------------------------ kernel wrappers -----------------------------

def _const_spec(shape):
    n = len(shape)
    return pl.BlockSpec(shape, lambda *args, n=n: (0,) * n)


def attention_block(x, p, mask, n_heads, compute_dtype):
    B, L, D = x.shape
    cd = compute_dtype
    kern = functools.partial(_attn_block_kernel, n_heads=n_heads,
                             scale=1.0 / math.sqrt(D // n_heads),
                             compute_dtype=cd)
    return pl.pallas_call(
        kern,
        out_shape=jax.ShapeDtypeStruct((B, L, D), x.dtype),
        grid=(B,),
        in_specs=[pl.BlockSpec((1, L, D), lambda b: (b, 0, 0)),
                  _const_spec((1, D)), _const_spec((1, D)),
                  _const_spec((D, 3 * D)), _const_spec((1, 3 * D)),
                  _const_spec((D, D)), _const_spec((1, D)),
                  _const_spec((L, L))],
        out_specs=pl.BlockSpec((1, L, D), lambda b: (b, 0, 0)),
        compiler_params=pltpu.CompilerParams(
            dimension_semantics=("parallel",),
            vmem_limit_bytes=_VMEM_LIMIT),
    )(x,
      p["ln1_g"].reshape(1, D), p["ln1_b"].reshape(1, D),
      p["attn_in_w"].astype(cd), p["attn_in_b"].reshape(1, 3 * D),
      p["attn_out_w"].astype(cd), p["attn_out_b"].reshape(1, D),
      mask)


def _pick_block_m(m, max_rows=256):
    # Largest multiple-of-8 divisor of m (<= max_rows) that gives >= 2 blocks,
    # so both v7x TensorCores get work; fall back to the full extent.
    cands = [t for t in range(8, min(m, max_rows) + 1, 8)
             if m % t == 0 and t < m]
    return max(cands) if cands else m


def mlp_block(x, p, compute_dtype):
    B, L, D = x.shape
    M = B * L
    F = p["mlp_fc_w"].shape[1]
    cd = compute_dtype
    tm = _pick_block_m(M)
    x2 = x.reshape(M, D)
    kern = functools.partial(_mlp_block_kernel, compute_dtype=cd)
    out = pl.pallas_call(
        kern,
        out_shape=jax.ShapeDtypeStruct((M, D), x.dtype),
        grid=(M // tm,),
        in_specs=[pl.BlockSpec((tm, D), lambda i: (i, 0)),
                  _const_spec((1, D)), _const_spec((1, D)),
                  _const_spec((D, F)), _const_spec((1, F)),
                  _const_spec((F, D)), _const_spec((1, D))],
        out_specs=pl.BlockSpec((tm, D), lambda i: (i, 0)),
        compiler_params=pltpu.CompilerParams(
            dimension_semantics=("parallel",),
            vmem_limit_bytes=_VMEM_LIMIT),
    )(x2,
      p["ln2_g"].reshape(1, D), p["ln2_b"].reshape(1, D),
      p["mlp_fc_w"].astype(cd), p["mlp_fc_b"].reshape(1, F),
      p["mlp_proj_w"].astype(cd), p["mlp_proj_b"].reshape(1, D))
    return out.reshape(B, L, D)


def final_projection(x, eot, lnf_g, lnf_b, text_proj, compute_dtype):
    B, L, D = x.shape
    E = text_proj.shape[1]
    cd = compute_dtype
    kern = functools.partial(_final_kernel, compute_dtype=cd)
    out = pl.pallas_call(
        kern,
        out_shape=jax.ShapeDtypeStruct((B, 1, E), jnp.float32),
        grid_spec=pltpu.PrefetchScalarGridSpec(
            num_scalar_prefetch=1,
            grid=(B,),
            in_specs=[pl.BlockSpec((1, L, D), lambda b, eot: (b, 0, 0)),
                      pl.BlockSpec((1, D), lambda b, eot: (0, 0)),
                      pl.BlockSpec((1, D), lambda b, eot: (0, 0)),
                      pl.BlockSpec((D, E), lambda b, eot: (0, 0))],
            out_specs=pl.BlockSpec((1, 1, E), lambda b, eot: (b, 0, 0))),
        compiler_params=pltpu.CompilerParams(
            dimension_semantics=("parallel",),
            vmem_limit_bytes=_VMEM_LIMIT),
    )(eot.astype(jnp.int32), x,
      lnf_g.reshape(1, D), lnf_b.reshape(1, D), text_proj.astype(cd))
    return out.reshape(B, E)


# --------------------------- model (glue in JAX) ----------------------------

@functools.partial(jax.jit, static_argnames=("n_heads", "compute_dtype"))
def text_encoder_forward(params, prompts, tokenized_prompts, *, n_heads,
                         compute_dtype=jnp.float32):
    B, L, D = prompts.shape
    # prompts + positional_embedding: single elementwise add, left to XLA.
    x = prompts.astype(jnp.float32) + params["pos_emb"][None]
    # permute(1,0,2) -> transformer -> permute(1,0,2): no-op under (B, L, D).
    for p in params["blocks"]:
        x = attention_block(x, p, params["attn_mask"], n_heads, compute_dtype)
        x = mlp_block(x, p, compute_dtype)
    eot = jnp.argmax(tokenized_prompts, axis=-1)  # tokenized_prompts.argmax(dim=-1)
    return final_projection(x, eot, params["lnf_g"], params["lnf_b"],
                            params["text_proj"], compute_dtype)


# ------------------------- pure-JAX reference check -------------------------

def ref_forward(params, prompts, tokenized_prompts, n_heads):
    B, L, D = prompts.shape
    hd = D // n_heads

    def ln(x, g, b):
        m = x.mean(-1, keepdims=True)
        v = ((x - m) ** 2).mean(-1, keepdims=True)
        return (x - m) * jax.lax.rsqrt(v + 1e-5) * g + b

    x = prompts + params["pos_emb"][None]
    mask = params["attn_mask"]
    for p in params["blocks"]:
        y = ln(x, p["ln1_g"], p["ln1_b"])
        qkv = y @ p["attn_in_w"] + p["attn_in_b"]
        qkv = qkv.reshape(B, L, 3, n_heads, hd)
        q, k, v = (qkv[:, :, i].transpose(0, 2, 1, 3) for i in range(3))
        s = jnp.einsum("bhqd,bhkd->bhqk", q, k) / math.sqrt(hd) + mask
        a = jax.nn.softmax(s, axis=-1)
        o = jnp.einsum("bhqk,bhkd->bhqd", a, v).transpose(0, 2, 1, 3).reshape(B, L, D)
        x = x + o @ p["attn_out_w"] + p["attn_out_b"]
        y = ln(x, p["ln2_g"], p["ln2_b"])
        h = y @ p["mlp_fc_w"] + p["mlp_fc_b"]
        h = h * jax.nn.sigmoid(1.702 * h)
        x = x + h @ p["mlp_proj_w"] + p["mlp_proj_b"]
    x = ln(x, params["lnf_g"], params["lnf_b"])
    eot = jnp.argmax(tokenized_prompts, axis=-1)
    return x[jnp.arange(B), eot] @ params["text_proj"]


# ----------------------------- parameter init -------------------------------

def init_params(key, *, n_layers, seq_len, width, mlp_dim, embed_dim):
    def nrm(k, shape, std=0.02):
        return jax.random.normal(k, shape, jnp.float32) * std

    keys = iter(jax.random.split(key, 4 * n_layers + 2))
    blocks = []
    for _ in range(n_layers):
        blocks.append(dict(
            ln1_g=jnp.ones((width,), jnp.float32),
            ln1_b=jnp.zeros((width,), jnp.float32),
            attn_in_w=nrm(next(keys), (width, 3 * width)),   # == torch in_proj_weight.T
            attn_in_b=jnp.zeros((3 * width,), jnp.float32),
            attn_out_w=nrm(next(keys), (width, width)),
            attn_out_b=jnp.zeros((width,), jnp.float32),
            ln2_g=jnp.ones((width,), jnp.float32),
            ln2_b=jnp.zeros((width,), jnp.float32),
            mlp_fc_w=nrm(next(keys), (width, mlp_dim)),
            mlp_fc_b=jnp.zeros((mlp_dim,), jnp.float32),
            mlp_proj_w=nrm(next(keys), (mlp_dim, width)),
            mlp_proj_b=jnp.zeros((width,), jnp.float32),
        ))
    causal = jnp.triu(jnp.full((seq_len, seq_len), -1e9, jnp.float32), k=1)
    return dict(
        pos_emb=nrm(next(keys), (seq_len, width), 0.01),
        blocks=blocks,
        lnf_g=jnp.ones((width,), jnp.float32),
        lnf_b=jnp.zeros((width,), jnp.float32),
        text_proj=nrm(next(keys), (width, embed_dim), width ** -0.5),
        attn_mask=causal,
    )


# ---------------------------------- main -------------------------------------

if __name__ == "__main__":
    B, L, D, H, LAYERS = 2, 8, 32, 4, 2
    MLP, E = 4 * D, 32

    key = jax.random.PRNGKey(0)
    kp, kprompts, ktok = jax.random.split(key, 3)

    params = init_params(kp, n_layers=LAYERS, seq_len=L, width=D,
                         mlp_dim=MLP, embed_dim=E)

    prompts = jax.random.normal(kprompts, (B, L, D), jnp.float32) * 0.02
    tokenized_prompts = jax.random.randint(ktok, (B, L), 0, 100)
    # plant an EOT (max token id) per row, like CLIP's argmax(dim=-1) lookup
    tokenized_prompts = tokenized_prompts.at[0, 5].set(49407).at[1, 7].set(49407)

    ref = ref_forward(params, prompts, tokenized_prompts, H)

    # f32 MXU operands: strict correctness check vs the pure-JAX reference.
    out = text_encoder_forward(params, prompts, tokenized_prompts,
                               n_heads=H, compute_dtype=jnp.float32)
    out = jax.block_until_ready(out)
    assert out.shape == (B, E), out.shape
    max_err = float(jnp.max(jnp.abs(out - ref)))
    assert max_err < 1e-3, f"f32 mismatch vs reference: {max_err}"

    # bf16 MXU operands (perf config for v5e/v6e/v7x): smoke-test tolerance,
    # LN/softmax/GELU statistics stay f32 inside the kernels.
    out_bf16 = text_encoder_forward(params, prompts, tokenized_prompts,
                                    n_heads=H, compute_dtype=jnp.bfloat16)
    out_bf16 = jax.block_until_ready(out_bf16)
    assert bool(jnp.all(jnp.isfinite(out_bf16)))
    bf16_err = float(jnp.max(jnp.abs(out_bf16 - ref)))
    assert bf16_err < 2e-1, f"bf16 path diverged from reference: {bf16_err}"

    print("KERNEL_OK")
</pallas_src>

<mosaic_0001>
module attributes {stable_mosaic.version = 11 : i64} {
  func.func @_mlp_block_kernel(%arg0: i32, %arg1: memref<8x32xf32, #tpu.memory_space<vmem>>, %arg2: memref<1x32xf32, #tpu.memory_space<vmem>>, %arg3: memref<1x32xf32, #tpu.memory_space<vmem>>, %arg4: memref<32x128xf32, #tpu.memory_space<vmem>>, %arg5: memref<1x128xf32, #tpu.memory_space<vmem>>, %arg6: memref<128x32xf32, #tpu.memory_space<vmem>>, %arg7: memref<1x32xf32, #tpu.memory_space<vmem>>, %arg8: memref<8x32xf32, #tpu.memory_space<vmem>>) attributes {dimension_semantics = [#tpu.dimension_semantics<parallel>], iteration_bounds = array<i64: 2>, scalar_prefetch = 0 : i64, scratch_operands = 0 : i64, tpu.core_type = #tpu.core_type<tc>, window_params = [{transform_indices = @transform_0, window_bounds = array<i64: 8, 32>}, {pipeline_mode = #tpu.pipeline_mode<synchronous>, transform_indices = @transform_1, window_bounds = array<i64: 1, 32>}, {pipeline_mode = #tpu.pipeline_mode<synchronous>, transform_indices = @transform_2, window_bounds = array<i64: 1, 32>}, {pipeline_mode = #tpu.pipeline_mode<synchronous>, transform_indices = @transform_3, window_bounds = array<i64: 32, 128>}, {pipeline_mode = #tpu.pipeline_mode<synchronous>, transform_indices = @transform_4, window_bounds = array<i64: 1, 128>}, {pipeline_mode = #tpu.pipeline_mode<synchronous>, transform_indices = @transform_5, window_bounds = array<i64: 128, 32>}, {pipeline_mode = #tpu.pipeline_mode<synchronous>, transform_indices = @transform_6, window_bounds = array<i64: 1, 32>}, {transform_indices = @transform_7, window_bounds = array<i64: 8, 32>}]} {
    %c0 = arith.constant 0 : index
    %c0_0 = arith.constant 0 : index
    %0 = vector.load %arg1[%c0, %c0_0] : memref<8x32xf32, #tpu.memory_space<vmem>>, vector<8x32xf32>
    %c0_1 = arith.constant 0 : index
    %c0_2 = arith.constant 0 : index
    %1 = vector.load %arg2[%c0_1, %c0_2] : memref<1x32xf32, #tpu.memory_space<vmem>>, vector<1x32xf32>
    %c0_3 = arith.constant 0 : index
    %c0_4 = arith.constant 0 : index
    %2 = vector.load %arg3[%c0_3, %c0_4] : memref<1x32xf32, #tpu.memory_space<vmem>>, vector<1x32xf32>
    %cst = arith.constant dense<0.000000e+00> : vector<8xf32>
    %3 = vector.multi_reduction <add>, %0, %cst [1] : vector<8x32xf32> to vector<8xf32>
    %4 = vector.shape_cast %3 : vector<8xf32> to vector<8x1xf32>
    %cst_5 = arith.constant 3.200000e+01 : f32
    %5 = vector.broadcast %cst_5 : f32 to vector<8x1xf32>
    %6 = arith.divf %4, %5 : vector<8x1xf32>
    %7 = vector.broadcast %6 : vector<8x1xf32> to vector<8x32xf32>
    %8 = arith.subf %0, %7 : vector<8x32xf32>
    %9 = arith.mulf %8, %8 : vector<8x32xf32>
    %cst_6 = arith.constant dense<0.000000e+00> : vector<8xf32>
    %10 = vector.multi_reduction <add>, %9, %cst_6 [1] : vector<8x32xf32> to vector<8xf32>
    %11 = vector.shape_cast %10 : vector<8xf32> to vector<8x1xf32>
    %cst_7 = arith.constant 3.200000e+01 : f32
    %12 = vector.broadcast %cst_7 : f32 to vector<8x1xf32>
    %13 = arith.divf %11, %12 : vector<8x1xf32>
    %14 = vector.broadcast %6 : vector<8x1xf32> to vector<8x32xf32>
    %15 = arith.subf %0, %14 : vector<8x32xf32>
    %cst_8 = arith.constant 9.99999974E-6 : f32
    %16 = vector.broadcast %cst_8 : f32 to vector<8x1xf32>
    %17 = arith.addf %13, %16 : vector<8x1xf32>
    %18 = math.rsqrt %17 : vector<8x1xf32>
    %19 = vector.broadcast %18 : vector<8x1xf32> to vector<8x32xf32>
    %20 = arith.mulf %15, %19 : vector<8x32xf32>
    %21 = vector.broadcast %1 : vector<1x32xf32> to vector<8x32xf32>
    %22 = arith.mulf %20, %21 : vector<8x32xf32>
    %23 = vector.broadcast %2 : vector<1x32xf32> to vector<8x32xf32>
    %24 = arith.addf %22, %23 : vector<8x32xf32>
    %c0_9 = arith.constant 0 : index
    %c0_10 = arith.constant 0 : index
    %25 = vector.load %arg4[%c0_9, %c0_10] : memref<32x128xf32, #tpu.memory_space<vmem>>, vector<32x128xf32>
    %cst_11 = arith.constant dense<0.000000e+00> : vector<8x128xf32>
    %26 = tpu.matmul %24, %25, %cst_11 {dimension_numbers = #tpu.dot_dimension_numbers<[1], [0], [0], [1], [0, 0, 1, 1], [], []>} : vector<8x32xf32>, vector<32x128xf32>, vector<8x128xf32> -> vector<8x128xf32>
    %c0_12 = arith.constant 0 : index
    %c0_13 = arith.constant 0 : index
    %27 = vector.load %arg5[%c0_12, %c0_13] : memref<1x128xf32, #tpu.memory_space<vmem>>, vector<1x128xf32>
    %28 = vector.broadcast %27 : vector<1x128xf32> to vector<8x128xf32>
    %29 = arith.addf %26, %28 : vector<8x128xf32>
    %cst_14 = arith.constant 1.702000e+00 : f32
    %30 = vector.broadcast %cst_14 : f32 to vector<8x128xf32>
    %31 = arith.mulf %30, %29 : vector<8x128xf32>
    %32 = arith.negf %31 : vector<8x128xf32>
    %33 = math.exp %32 : vector<8x128xf32>
    %cst_15 = arith.constant 1.000000e+00 : f32
    %34 = vector.broadcast %cst_15 : f32 to vector<8x128xf32>
    %35 = arith.addf %34, %33 : vector<8x128xf32>
    %36 = arith.divf %34, %35 : vector<8x128xf32>
    %37 = arith.mulf %29, %36 : vector<8x128xf32>
    %c0_16 = arith.constant 0 : index
    %c0_17 = arith.constant 0 : index
    %38 = vector.load %arg6[%c0_16, %c0_17] : memref<128x32xf32, #tpu.memory_space<vmem>>, vector<128x32xf32>
    %cst_18 = arith.constant dense<0.000000e+00> : vector<8x32xf32>
    %39 = tpu.matmul %37, %38, %cst_18 {dimension_numbers = #tpu.dot_dimension_numbers<[1], [0], [0], [1], [0, 0, 1, 1], [], []>} : vector<8x128xf32>, vector<128x32xf32>, vector<8x32xf32> -> vector<8x32xf32>
    %c0_19 = arith.constant 0 : index
    %c0_20 = arith.constant 0 : index
    %40 = vector.load %arg7[%c0_19, %c0_20] : memref<1x32xf32, #tpu.memory_space<vmem>>, vector<1x32xf32>
    %41 = vector.broadcast %40 : vector<1x32xf32> to vector<8x32xf32>
    %42 = arith.addf %39, %41 : vector<8x32xf32>
    %43 = arith.addf %0, %42 : vector<8x32xf32>
    %c0_21 = arith.constant 0 : index
    %c0_22 = arith.constant 0 : index
    %44 = vector.load %arg8[%c0_21, %c0_22] : memref<8x32xf32, #tpu.memory_space<vmem>>, vector<8x32xf32>
    tpu.vector_store %arg8[%c0_21, %c0_22], %43 {strides = array<i32>} : memref<8x32xf32, #tpu.memory_space<vmem>>, vector<8x32xf32>,
    return
  }
  func.func @transform_0(%arg0: i32) -> (i32, i32) {
    %c0_i32 = arith.constant 0 : i32
    %c0_i32_0 = arith.constant 0 : i32
    return %arg0, %c0_i32 : i32, i32
  }
  func.func @transform_1(%arg0: i32) -> (i32, i32) {
    %c0_i32 = arith.constant 0 : i32
    %c0_i32_0 = arith.constant 0 : i32
    %c0_i32_1 = arith.constant 0 : i32
    return %c0_i32, %c0_i32_0 : i32, i32
  }
  func.func @transform_2(%arg0: i32) -> (i32, i32) {
    %c0_i32 = arith.constant 0 : i32
    %c0_i32_0 = arith.constant 0 : i32
    %c0_i32_1 = arith.constant 0 : i32
    return %c0_i32, %c0_i32_0 : i32, i32
  }
  func.func @transform_3(%arg0: i32) -> (i32, i32) {
    %c0_i32 = arith.constant 0 : i32
    %c0_i32_0 = arith.constant 0 : i32
    %c0_i32_1 = arith.constant 0 : i32
    return %c0_i32, %c0_i32_0 : i32, i32
  }
  func.func @transform_4(%arg0: i32) -> (i32, i32) {
    %c0_i32 = arith.constant 0 : i32
    %c0_i32_0 = arith.constant 0 : i32
    %c0_i32_1 = arith.constant 0 : i32
    return %c0_i32, %c0_i32_0 : i32, i32
  }
  func.func @transform_5(%arg0: i32) -> (i32, i32) {
    %c0_i32 = arith.constant 0 : i32
    %c0_i32_0 = arith.constant 0 : i32
    %c0_i32_1 = arith.constant 0 : i32
    return %c0_i32, %c0_i32_0 : i32, i32
  }
  func.func @transform_6(%arg0: i32) -> (i32, i32) {
    %c0_i32 = arith.constant 0 : i32
    %c0_i32_0 = arith.constant 0 : i32
    %c0_i32_1 = arith.constant 0 : i32
    return %c0_i32, %c0_i32_0 : i32, i32
  }
  func.func @transform_7(%arg0: i32) -> (i32, i32) {
    %c0_i32 = arith.constant 0 : i32
    %c0_i32_0 = arith.constant 0 : i32
    return %arg0, %c0_i32 : i32, i32
  }
}

module attributes {stable_mosaic.version = 11 : i64} {
  func.func @_attn_block_kernel(%arg0: i32, %arg1: memref<1x8x32xf32, #tpu.memory_space<vmem>>, %arg2: memref<1x32xf32, #tpu.memory_space<vmem>>, %arg3: memref<1x32xf32, #tpu.memory_space<vmem>>, %arg4: memref<32x96xf32, #tpu.memory_space<vmem>>, %arg5: memref<1x96xf32, #tpu.memory_space<vmem>>, %arg6: memref<32x32xf32, #tpu.memory_space<vmem>>, %arg7: memref<1x32xf32, #tpu.memory_space<vmem>>, %arg8: memref<8x8xf32, #tpu.memory_space<vmem>>, %arg9: memref<1x8x32xf32, #tpu.memory_space<vmem>>) attributes {dimension_semantics = [#tpu.dimension_semantics<parallel>], iteration_bounds = array<i64: 2>, scalar_prefetch = 0 : i64, scratch_operands = 0 : i64, tpu.core_type = #tpu.core_type<tc>, window_params = [{transform_indices = @transform_0, window_bounds = array<i64: 1, 8, 32>}, {pipeline_mode = #tpu.pipeline_mode<synchronous>, transform_indices = @transform_1, window_bounds = array<i64: 1, 32>}, {pipeline_mode = #tpu.pipeline_mode<synchronous>, transform_indices = @transform_2, window_bounds = array<i64: 1, 32>}, {pipeline_mode = #tpu.pipeline_mode<synchronous>, transform_indices = @transform_3, window_bounds = array<i64: 32, 96>}, {pipeline_mode = #tpu.pipeline_mode<synchronous>, transform_indices = @transform_4, window_bounds = array<i64: 1, 96>}, {pipeline_mode = #tpu.pipeline_mode<synchronous>, transform_indices = @transform_5, window_bounds = array<i64: 32, 32>}, {pipeline_mode = #tpu.pipeline_mode<synchronous>, transform_indices = @transform_6, window_bounds = array<i64: 1, 32>}, {pipeline_mode = #tpu.pipeline_mode<synchronous>, transform_indices = @transform_7, window_bounds = array<i64: 8, 8>}, {transform_indices = @transform_8, window_bounds = array<i64: 1, 8, 32>}]} {
    %c0 = arith.constant 0 : index
    %c0_0 = arith.constant 0 : index
    %c0_1 = arith.constant 0 : index
    %0 = vector.load %arg1[%c0, %c0_0, %c0_1] : memref<1x8x32xf32, #tpu.memory_space<vmem>>, vector<1x8x32xf32>
    %1 = vector.shape_cast %0 : vector<1x8x32xf32> to vector<8x32xf32>
    %c0_2 = arith.constant 0 : index
    %c0_3 = arith.constant 0 : index
    %2 = vector.load %arg2[%c0_2, %c0_3] : memref<1x32xf32, #tpu.memory_space<vmem>>, vector<1x32xf32>
    %c0_4 = arith.constant 0 : index
    %c0_5 = arith.constant 0 : index
    %3 = vector.load %arg3[%c0_4, %c0_5] : memref<1x32xf32, #tpu.memory_space<vmem>>, vector<1x32xf32>
    %cst = arith.constant dense<0.000000e+00> : vector<8xf32>
    %4 = vector.multi_reduction <add>, %1, %cst [1] : vector<8x32xf32> to vector<8xf32>
    %5 = vector.shape_cast %4 : vector<8xf32> to vector<8x1xf32>
    %cst_6 = arith.constant 3.200000e+01 : f32
    %6 = vector.broadcast %cst_6 : f32 to vector<8x1xf32>
    %7 = arith.divf %5, %6 : vector<8x1xf32>
    %8 = vector.broadcast %7 : vector<8x1xf32> to vector<8x32xf32>
    %9 = arith.subf %1, %8 : vector<8x32xf32>
    %10 = arith.mulf %9, %9 : vector<8x32xf32>
    %cst_7 = arith.constant dense<0.000000e+00> : vector<8xf32>
    %11 = vector.multi_reduction <add>, %10, %cst_7 [1] : vector<8x32xf32> to vector<8xf32>
    %12 = vector.shape_cast %11 : vector<8xf32> to vector<8x1xf32>
    %cst_8 = arith.constant 3.200000e+01 : f32
    %13 = vector.broadcast %cst_8 : f32 to vector<8x1xf32>
    %14 = arith.divf %12, %13 : vector<8x1xf32>
    %15 = vector.broadcast %7 : vector<8x1xf32> to vector<8x32xf32>
    %16 = arith.subf %1, %15 : vector<8x32xf32>
    %cst_9 = arith.constant 9.99999974E-6 : f32
    %17 = vector.broadcast %cst_9 : f32 to vector<8x1xf32>
    %18 = arith.addf %14, %17 : vector<8x1xf32>
    %19 = math.rsqrt %18 : vector<8x1xf32>
    %20 = vector.broadcast %19 : vector<8x1xf32> to vector<8x32xf32>
    %21 = arith.mulf %16, %20 : vector<8x32xf32>
    %22 = vector.broadcast %2 : vector<1x32xf32> to vector<8x32xf32>
    %23 = arith.mulf %21, %22 : vector<8x32xf32>
    %24 = vector.broadcast %3 : vector<1x32xf32> to vector<8x32xf32>
    %25 = arith.addf %23, %24 : vector<8x32xf32>
    %c0_10 = arith.constant 0 : index
    %c0_11 = arith.constant 0 : index
    %26 = vector.load %arg4[%c0_10, %c0_11] : memref<32x96xf32, #tpu.memory_space<vmem>>, vector<32x96xf32>
    %cst_12 = arith.constant dense<0.000000e+00> : vector<8x96xf32>
    %27 = tpu.matmul %25, %26, %cst_12 {dimension_numbers = #tpu.dot_dimension_numbers<[1], [0], [0], [1], [0, 0, 1, 1], [], []>} : vector<8x32xf32>, vector<32x96xf32>, vector<8x96xf32> -> vector<8x96xf32>
    %c0_13 = arith.constant 0 : index
    %c0_14 = arith.constant 0 : index
    %28 = vector.load %arg5[%c0_13, %c0_14] : memref<1x96xf32, #tpu.memory_space<vmem>>, vector<1x96xf32>
    %29 = vector.broadcast %28 : vector<1x96xf32> to vector<8x96xf32>
    %30 = arith.addf %27, %29 : vector<8x96xf32>
    %31 = vector.extract_strided_slice %30 {offsets = [0, 0], sizes = [8, 32], strides = [1, 1]} : vector<8x96xf32> to vector<8x32xf32>
    %32 = vector.shape_cast %31 : vector<8x32xf32> to vector<8x4x8xf32>
    %33 = vector.extract_strided_slice %30 {offsets = [0, 32], sizes = [8, 32], strides = [1, 1]} : vector<8x96xf32> to vector<8x32xf32>
    %34 = vector.shape_cast %33 : vector<8x32xf32> to vector<8x4x8xf32>
    %35 = vector.extract_strided_slice %30 {offsets = [0, 64], sizes = [8, 32], strides = [1, 1]} : vector<8x96xf32> to vector<8x32xf32>
    %36 = vector.shape_cast %35 : vector<8x32xf32> to vector<8x4x8xf32>
    "tpu.trace_start"() <{level = 10 : i32, message = "qhd,khd->hqk"}> : () -> ()
    %cst_15 = arith.constant dense<0.000000e+00> : vector<4x8x8xf32>
    %37 = tpu.matmul %32, %34, %cst_15 {dimension_numbers = #tpu.dot_dimension_numbers<[2], [2], [0], [0], [0, 1, 0, 0, 1, 0], [1], [1]>} : vector<8x4x8xf32>, vector<8x4x8xf32>, vector<4x8x8xf32> -> vector<4x8x8xf32>
    "tpu.trace_stop"() : () -> ()
    %cst_16 = arith.constant 0.353553385 : f32
    %38 = vector.broadcast %cst_16 : f32 to vector<4x8x8xf32>
    %39 = arith.mulf %37, %38 : vector<4x8x8xf32>
    %c0_17 = arith.constant 0 : index
    %c0_18 = arith.constant 0 : index
    %40 = vector.load %arg8[%c0_17, %c0_18] : memref<8x8xf32, #tpu.memory_space<vmem>>, vector<8x8xf32>
    %41 = vector.shape_cast %40 : vector<8x8xf32> to vector<1x8x8xf32>
    %42 = vector.broadcast %41 : vector<1x8x8xf32> to vector<4x8x8xf32>
    %43 = arith.addf %39, %42 : vector<4x8x8xf32>
    %cst_19 = arith.constant dense<0xFF800000> : vector<4x8xf32>
    %44 = vector.multi_reduction <maximumf>, %43, %cst_19 [2] : vector<4x8x8xf32> to vector<4x8xf32>
    %45 = vector.shape_cast %44 : vector<4x8xf32> to vector<4x8x1xf32>
    %46 = vector.broadcast %45 : vector<4x8x1xf32> to vector<4x8x8xf32>
    %47 = arith.subf %43, %46 : vector<4x8x8xf32>
    %48 = math.exp %47 : vector<4x8x8xf32>
    %cst_20 = arith.constant dense<0.000000e+00> : vector<4x8xf32>
    %49 = vector.multi_reduction <add>, %48, %cst_20 [2] : vector<4x8x8xf32> to vector<4x8xf32>
    %50 = vector.shape_cast %49 : vector<4x8xf32> to vector<4x8x1xf32>
    %51 = vector.broadcast %50 : vector<4x8x1xf32> to vector<4x8x8xf32>
    %52 = arith.divf %48, %51 : vector<4x8x8xf32>
    "tpu.trace_start"() <{level = 10 : i32, message = "hqk,khd->qhd"}> : () -> ()
    %cst_21 = arith.constant dense<0.000000e+00> : vector<4x8x8xf32>
    %53 = tpu.matmul %36, %52, %cst_21 {dimension_numbers = #tpu.dot_dimension_numbers<[0], [2], [2], [1], [0, 1, 0, 2, 1, 1], [1], [0]>} : vector<8x4x8xf32>, vector<4x8x8xf32>, vector<4x8x8xf32> -> vector<4x8x8xf32>
    %54 = tpu.transpose %53, [2, 0, 1] : vector<4x8x8xf32> -> vector<8x4x8xf32>
    "tpu.trace_stop"() : () -> ()
    %55 = vector.shape_cast %54 : vector<8x4x8xf32> to vector<8x32xf32>
    %c0_22 = arith.constant 0 : index
    %c0_23 = arith.constant 0 : index
    %56 = vector.load %arg6[%c0_22, %c0_23] : memref<32x32xf32, #tpu.memory_space<vmem>>, vector<32x32xf32>
    %cst_24 = arith.constant dense<0.000000e+00> : vector<8x32xf32>
    %57 = tpu.matmul %55, %56, %cst_24 {dimension_numbers = #tpu.dot_dimension_numbers<[1], [0], [0], [1], [0, 0, 1, 1], [], []>} : vector<8x32xf32>, vector<32x32xf32>, vector<8x32xf32> -> vector<8x32xf32>
    %c0_25 = arith.constant 0 : index
    %c0_26 = arith.constant 0 : index
    %58 = vector.load %arg7[%c0_25, %c0_26] : memref<1x32xf32, #tpu.memory_space<vmem>>, vector<1x32xf32>
    %59 = vector.broadcast %58 : vector<1x32xf32> to vector<8x32xf32>
    %60 = arith.addf %57, %59 : vector<8x32xf32>
    %61 = arith.addf %1, %60 : vector<8x32xf32>
    %c0_27 = arith.constant 0 : index
    %c0_28 = arith.constant 0 : index
    %c0_29 = arith.constant 0 : index
    %62 = vector.load %arg9[%c0_27, %c0_28, %c0_29] : memref<1x8x32xf32, #tpu.memory_space<vmem>>, vector<1x8x32xf32>
    %63 = vector.shape_cast %62 : vector<1x8x32xf32> to vector<8x32xf32>
    %64 = vector.shape_cast %61 : vector<8x32xf32> to vector<1x8x32xf32>
    tpu.vector_store %arg9[%c0_27, %c0_28, %c0_29], %64 {strides = array<i32>} : memref<1x8x32xf32, #tpu.memory_space<vmem>>, vector<1x8x32xf32>,
    return
  }
  func.func @transform_0(%arg0: i32) -> (i32, i32, i32) {
    %c0_i32 = arith.constant 0 : i32
    %c0_i32_0 = arith.constant 0 : i32
    %c0_i32_1 = arith.constant 0 : i32
    return %arg0, %c0_i32, %c0_i32_0 : i32, i32, i32
  }
  func.func @transform_1(%arg0: i32) -> (i32, i32) {
    %c0_i32 = arith.constant 0 : i32
    %c0_i32_0 = arith.constant 0 : i32
    %c0_i32_1 = arith.constant 0 : i32
    return %c0_i32, %c0_i32_0 : i32, i32
  }
  func.func @transform_2(%arg0: i32) -> (i32, i32) {
    %c0_i32 = arith.constant 0 : i32
    %c0_i32_0 = arith.constant 0 : i32
    %c0_i32_1 = arith.constant 0 : i32
    return %c0_i32, %c0_i32_0 : i32, i32
  }
  func.func @transform_3(%arg0: i32) -> (i32, i32) {
    %c0_i32 = arith.constant 0 : i32
    %c0_i32_0 = arith.constant 0 : i32
    %c0_i32_1 = arith.constant 0 : i32
    return %c0_i32, %c0_i32_0 : i32, i32
  }
  func.func @transform_4(%arg0: i32) -> (i32, i32) {
    %c0_i32 = arith.constant 0 : i32
    %c0_i32_0 = arith.constant 0 : i32
    %c0_i32_1 = arith.constant 0 : i32
    return %c0_i32, %c0_i32_0 : i32, i32
  }
  func.func @transform_5(%arg0: i32) -> (i32, i32) {
    %c0_i32 = arith.constant 0 : i32
    %c0_i32_0 = arith.constant 0 : i32
    %c0_i32_1 = arith.constant 0 : i32
    return %c0_i32, %c0_i32_0 : i32, i32
  }
  func.func @transform_6(%arg0: i32) -> (i32, i32) {
    %c0_i32 = arith.constant 0 : i32
    %c0_i32_0 = arith.constant 0 : i32
    %c0_i32_1 = arith.constant 0 : i32
    return %c0_i32, %c0_i32_0 : i32, i32
  }
  func.func @transform_7(%arg0: i32) -> (i32, i32) {
    %c0_i32 = arith.constant 0 : i32
    %c0_i32_0 = arith.constant 0 : i32
    %c0_i32_1 = arith.constant 0 : i32
    return %c0_i32, %c0_i32_0 : i32, i32
  }
  func.func @transform_8(%arg0: i32) -> (i32, i32, i32) {
    %c0_i32 = arith.constant 0 : i32
    %c0_i32_0 = arith.constant 0 : i32
    %c0_i32_1 = arith.constant 0 : i32
    return %arg0, %c0_i32, %c0_i32_0 : i32, i32, i32
  }
}

module attributes {stable_mosaic.version = 11 : i64} {
  func.func @_final_kernel(%arg0: i32, %arg1: memref<2xi32, #tpu.memory_space<smem>>, %arg2: memref<1x8x32xf32, #tpu.memory_space<vmem>>, %arg3: memref<1x32xf32, #tpu.memory_space<vmem>>, %arg4: memref<1x32xf32, #tpu.memory_space<vmem>>, %arg5: memref<32x32xf32, #tpu.memory_space<vmem>>, %arg6: memref<1x1x32xf32, #tpu.memory_space<vmem>>) attributes {dimension_semantics = [#tpu.dimension_semantics<parallel>], iteration_bounds = array<i64: 2>, scalar_prefetch = 1 : i64, scratch_operands = 0 : i64, tpu.core_type = #tpu.core_type<tc>, window_params = [{transform_indices = @transform_0, window_bounds = array<i64: 1, 8, 32>}, {pipeline_mode = #tpu.pipeline_mode<synchronous>, transform_indices = @transform_1, window_bounds = array<i64: 1, 32>}, {pipeline_mode = #tpu.pipeline_mode<synchronous>, transform_indices = @transform_2, window_bounds = array<i64: 1, 32>}, {pipeline_mode = #tpu.pipeline_mode<synchronous>, transform_indices = @transform_3, window_bounds = array<i64: 32, 32>}, {transform_indices = @transform_4, window_bounds = array<i64: 1, 1, 32>}]} {
    %0 = arith.index_cast %arg0 : i32 to index
    %1 = memref.load %arg1[%0] : memref<2xi32, #tpu.memory_space<smem>>
    %c0 = arith.constant 0 : index
    %2 = arith.index_cast %1 : i32 to index
    %c0_0 = arith.constant 0 : index
    %3 = vector.load %arg2[%c0, %2, %c0_0] : memref<1x8x32xf32, #tpu.memory_space<vmem>>, vector<1x1x32xf32>
    %4 = vector.shape_cast %3 : vector<1x1x32xf32> to vector<1x32xf32>
    %c0_1 = arith.constant 0 : index
    %c0_2 = arith.constant 0 : index
    %5 = vector.load %arg3[%c0_1, %c0_2] : memref<1x32xf32, #tpu.memory_space<vmem>>, vector<1x32xf32>
    %c0_3 = arith.constant 0 : index
    %c0_4 = arith.constant 0 : index
    %6 = vector.load %arg4[%c0_3, %c0_4] : memref<1x32xf32, #tpu.memory_space<vmem>>, vector<1x32xf32>
    %cst = arith.constant dense<0.000000e+00> : vector<1xf32>
    %7 = vector.multi_reduction <add>, %4, %cst [1] : vector<1x32xf32> to vector<1xf32>
    %8 = vector.shape_cast %7 : vector<1xf32> to vector<1x1xf32>
    %cst_5 = arith.constant 3.200000e+01 : f32
    %9 = vector.broadcast %cst_5 : f32 to vector<1x1xf32>
    %10 = arith.divf %8, %9 : vector<1x1xf32>
    %11 = vector.broadcast %10 : vector<1x1xf32> to vector<1x32xf32>
    %12 = arith.subf %4, %11 : vector<1x32xf32>
    %13 = arith.mulf %12, %12 : vector<1x32xf32>
    %cst_6 = arith.constant dense<0.000000e+00> : vector<1xf32>
    %14 = vector.multi_reduction <add>, %13, %cst_6 [1] : vector<1x32xf32> to vector<1xf32>
    %15 = vector.shape_cast %14 : vector<1xf32> to vector<1x1xf32>
    %cst_7 = arith.constant 3.200000e+01 : f32
    %16 = vector.broadcast %cst_7 : f32 to vector<1x1xf32>
    %17 = arith.divf %15, %16 : vector<1x1xf32>
    %18 = vector.broadcast %10 : vector<1x1xf32> to vector<1x32xf32>
    %19 = arith.subf %4, %18 : vector<1x32xf32>
    %cst_8 = arith.constant 9.99999974E-6 : f32
    %20 = vector.broadcast %cst_8 : f32 to vector<1x1xf32>
    %21 = arith.addf %17, %20 : vector<1x1xf32>
    %22 = math.rsqrt %21 : vector<1x1xf32>
    %23 = vector.broadcast %22 : vector<1x1xf32> to vector<1x32xf32>
    %24 = arith.mulf %19, %23 : vector<1x32xf32>
    %25 = arith.mulf %24, %5 : vector<1x32xf32>
    %26 = arith.addf %25, %6 : vector<1x32xf32>
    %c0_9 = arith.constant 0 : index
    %c0_10 = arith.constant 0 : index
    %27 = vector.load %arg5[%c0_9, %c0_10] : memref<32x32xf32, #tpu.memory_space<vmem>>, vector<32x32xf32>
    %cst_11 = arith.constant dense<0.000000e+00> : vector<1x32xf32>
    %28 = tpu.matmul %26, %27, %cst_11 {dimension_numbers = #tpu.dot_dimension_numbers<[1], [0], [0], [1], [0, 0, 1, 1], [], []>} : vector<1x32xf32>, vector<32x32xf32>, vector<1x32xf32> -> vector<1x32xf32>
    %29 = vector.shape_cast %28 : vector<1x32xf32> to vector<1x1x32xf32>
    %c0_12 = arith.constant 0 : index
    %c0_13 = arith.constant 0 : index
    %c0_14 = arith.constant 0 : index
    %30 = vector.load %arg6[%c0_12, %c0_13, %c0_14] : memref<1x1x32xf32, #tpu.memory_space<vmem>>, vector<1x1x32xf32>
    tpu.vector_store %arg6[%c0_12, %c0_13, %c0_14], %29 {strides = array<i32>} : memref<1x1x32xf32, #tpu.memory_space<vmem>>, vector<1x1x32xf32>,
    return
  }
  func.func @transform_0(%arg0: i32, %arg1: memref<2xi32, #tpu.memory_space<smem>>) -> (i32, i32, i32) {
    %c0_i32 = arith.constant 0 : i32
    %c0_i32_0 = arith.constant 0 : i32
    %c0_i32_1 = arith.constant 0 : i32
    return %arg0, %c0_i32, %c0_i32_0 : i32, i32, i32
  }
  func.func @transform_1(%arg0: i32, %arg1: memref<2xi32, #tpu.memory_space<smem>>) -> (i32, i32) {
    %c0_i32 = arith.constant 0 : i32
    %c0_i32_0 = arith.constant 0 : i32
    %c0_i32_1 = arith.constant 0 : i32
    return %c0_i32, %c0_i32_0 : i32, i32
  }
  func.func @transform_2(%arg0: i32, %arg1: memref<2xi32, #tpu.memory_space<smem>>) -> (i32, i32) {
    %c0_i32 = arith.constant 0 : i32
    %c0_i32_0 = arith.constant 0 : i32
    %c0_i32_1 = arith.constant 0 : i32
    return %c0_i32, %c0_i32_0 : i32, i32
  }
  func.func @transform_3(%arg0: i32, %arg1: memref<2xi32, #tpu.memory_space<smem>>) -> (i32, i32) {
    %c0_i32 = arith.constant 0 : i32
    %c0_i32_0 = arith.constant 0 : i32
    %c0_i32_1 = arith.constant 0 : i32
    return %c0_i32, %c0_i32_0 : i32, i32
  }
  func.func @transform_4(%arg0: i32, %arg1: memref<2xi32, #tpu.memory_space<smem>>) -> (i32, i32, i32) {
    %c0_i32 = arith.constant 0 : i32
    %c0_i32_0 = arith.constant 0 : i32
    %c0_i32_1 = arith.constant 0 : i32
    return %arg0, %c0_i32, %c0_i32_0 : i32, i32, i32
  }
}

</mosaic_0001>

<bundles_post_ra>
// kernel: text_encoder_forward.6
= control target key start
LH: loop header
LB: loop body
LE: loop exit
PB: predicated region body
PF: predicated region fallthrough
CT: control target
= control target key end

     0   :  { %s727_s24 = smov 0   ;;  %s832_s0 = inlined_call_operand.vmem [shape: f32[16,32], index: 0, kind: input, shape index: {}]   ;;  %s833_s1 = inlined_call_operand.vmem [shape: f32[1,32], index: 1, kind: input, shape index: {}]   ;;  %s834_s2 = inlined_call_operand.vmem [shape: f32[1,32], index: 2, kind: input, shape index: {}]   ;;  %s835_s3 = inlined_call_operand.vmem [shape: f32[32,128], index: 3, kind: input, shape index: {}]   ;;  %s836_s4 = inlined_call_operand.vmem [shape: f32[1,128], index: 4, kind: input, shape index: {}]   ;;  %s837_s5 = inlined_call_operand.vmem [shape: f32[128,32], index: 5, kind: input, shape index: {}]   ;;  %s838_s6 = inlined_call_operand.vmem [shape: f32[1,32], index: 6, kind: input, shape index: {}]   ;;  %s839_s7 = inlined_call_operand.vmem [shape: f32[16,32], index: 7, kind: output, shape index: {}]  }
   0x1 LB: > { %s546_s25 = sadd.s32 4294967295, %s682_s24   ;;  %p550_p0 = scmp.ge.s32.totalorder %s682_s24, 1  ;;  %s682_s24 = sphi %s727_s24, %s17_s24  }
   0x2   : > { %p236_p1 = scmp.lt.s32.totalorder %s682_s24, 3 }
   0x4   : > { %p237_p2 = pnand %p550_p0, %p236_p1 }
   0x5   : > { %p266_p3 = scmp.lt.s32.totalorder (!%p237_p2), %s546_s25, 1  ;;  %vm277_vm0 = vcmask (!%p237_p2), 261120   ;;  %v306_v7 = vld [vmem:[%s835_s3] sm:$0xff] (!%p237_p2)  ;;  %v307_v8 = vld [vmem:[%s835_s3 + $0x8] sm:$0xff] (!%p237_p2)  ;;  %v308_v9 = vld [vmem:[%s835_s3 + $0x10] sm:$0xff] (!%p237_p2)  ;;  %v684_v10 = vmov (!%p237_p2), 0.0|0.0  }
   0x6   : > { %240 = sbr.rel (%p237_p2) target bundleno = 791 (0x317), region = 48  ;;  %629 = vmatprep.subr.bf16.mxu0 (!%p237_p2), %v684_v10  ;;  %v630_v11 = vpack.c.bf16 (!%p237_p2), %v307_v8, %v306_v7  ;;  %v309_v12 = vld [vmem:[%s835_s3 + $0x18] sm:$0xff] (!%p237_p2)  ;;  %vm685_vm1 = vmmov (!%p237_p2), 0   ;;  %v686_v13 = vmov (!%p237_p2), 0.0   ;;  %635 = vmatprep.subr.bf16.mxu1 (!%p237_p2), %v684_v10  ;;  %v553_v19 = vld [vmem:[%s833_s1] ss:$0 sm:$0xff] (!%p237_p2) }
   0x7   : > { %591 = vmatprep.mubr.msk.f32.mxu0 (!%p237_p2), %vm685_vm1, %v686_v13  ;;  %626 = vmatprep.mubr.msk.f32.mxu1 (!%p237_p2), %vm685_vm1, %v686_v13  ;;  %v633_v14 = vpack.c.bf16 (!%p237_p2), %v309_v12, %v308_v9  ;;  %v554_v21 = vld [vmem:[%s834_s2] ss:$0 sm:$0xff] (!%p237_p2)  ;;  %v399_v25 = vld [vmem:[%s837_s5 + $0x8] sm:$0xff] (!%p237_p2)  ;;  %v400_v27 = vld [vmem:[%s837_s5 + $0x10] sm:$0xff] (!%p237_p2) }
   0x8   : > { %631 = vmatpush3.bf16.msra.mxu0 (!%p237_p2), %v630_v11  ;;  %v398_v24 = vld [vmem:[%s837_s5] sm:$0xff] (!%p237_p2)  ;;  %v401_v28 = vld [vmem:[%s837_s5 + $0x18] sm:$0xff] (!%p237_p2)  ;;  %v403_v31 = vld [vmem:[%s837_s5 + $0x28] sm:$0xff] (!%p237_p2) }
   0x9   : > { %632 = vmatprep.subr.bf16.mxu0 (!%p237_p2), %v684_v10  ;;  %v636_v26 = vpack.c.bf16 (!%p237_p2), %v399_v25, %v398_v24  ;;  %v639_v29 = vpack.c.bf16 (!%p237_p2), %v401_v28, %v400_v27  ;;  %v402_v30 = vld [vmem:[%s837_s5 + $0x20] sm:$0xff] (!%p237_p2)  ;;  %v404_v33 = vld [vmem:[%s837_s5 + $0x30] sm:$0xff] (!%p237_p2)  ;;  %v405_v34 = vld [vmem:[%s837_s5 + $0x38] sm:$0xff] (!%p237_p2) }
   0xa   : > { %v642_v32 = vpack.c.bf16 (!%p237_p2), %v403_v31, %v402_v30  ;;  %v645_v35 = vpack.c.bf16 (!%p237_p2), %v405_v34, %v404_v33  ;;  %v406_v36 = vld [vmem:[%s837_s5 + $0x40] sm:$0xff] (!%p237_p2)  ;;  %v407_v37 = vld [vmem:[%s837_s5 + $0x48] sm:$0xff] (!%p237_p2)  ;;  %v408_v39 = vld [vmem:[%s837_s5 + $0x50] sm:$0xff] (!%p237_p2) }
   0xb   : > { %637 = vmatpush3.bf16.msra.mxu1 (!%p237_p2), %v636_v26  ;;  %v648_v38 = vpack.c.bf16 (!%p237_p2), %v407_v37, %v406_v36  ;;  %v409_v40 = vld [vmem:[%s837_s5 + $0x58] sm:$0xff] (!%p237_p2)  ;;  %v410_v42 = vld [vmem:[%s837_s5 + $0x60] sm:$0xff] (!%p237_p2)  ;;  %v411_v43 = vld [vmem:[%s837_s5 + $0x68] sm:$0xff] (!%p237_p2) }
   0xc   : > { %634 = vmatpush3.bf16.msra.mxu0 (!%p237_p2), %v633_v14  ;;  %638 = vmatprep.subr.bf16.mxu1 (!%p237_p2), %v684_v10  ;;  %v651_v41 = vpack.c.bf16 (!%p237_p2), %v409_v40, %v408_v39  ;;  %v654_v44 = vpack.c.bf16 (!%p237_p2), %v411_v43, %v410_v42  ;;  %v412_v45 = vld [vmem:[%s837_s5 + $0x70] sm:$0xff] (!%p237_p2)  ;;  %v413_v46 = vld [vmem:[%s837_s5 + $0x78] sm:$0xff] (!%p237_p2)  ;;  %v555_v48 = vld [vmem:[%s836_s4] ss:$0 sm:$0xff] (!%p237_p2) }
   0xd   : > { %s841_s25 = smov (!%p266_p3, %s546_s25), 1  ;;  %v657_v47 = vpack.c.bf16 %v413_v46, %v412_v45  ;;  %v558_v58 = vld [vmem:[%s838_s6] ss:$0 sm:$0xff] }
   0xe   : > { %s551_s26 = sshll.u32 %s841_s25, 3 }
   0xf   : > { %s269_s29 = scalar_lea.vmem %s832_s0, %s551_s26  ;;  %640 = vmatpush3.bf16.msra.mxu1 %v639_v29  ;;  %s273_s17 = scalar_lea.vmem %s839_s7, %s551_s26 }
  0x10   : > { %v743_v0 = vld [vmem:[%s269_s29] sm:$0xff]  ;;  %641 = vmatprep.subr.bf16.mxu1 %v684_v10 }
  0x11   : > { %v278_v1 = vsel %vm277_vm0, %v743_v0, 0.0 }
  0x12   : > { %279 = vadd.xlane.f32.xlu0 %v278_v1 }
  0x13   : > { %643 = vmatpush3.bf16.msra.mxu1 %v642_v32 }
  0x14   : > { %644 = vmatprep.subr.bf16.mxu1 %v684_v10 }
  0x17   : > { %646 = vmatpush3.bf16.msra.mxu1 %v645_v35 }
  0x18   : > { %647 = vmatprep.subr.bf16.mxu1 %v684_v10 }
  0x1b   : > { %649 = vmatpush3.bf16.msra.mxu1 %v648_v38 }
  0x1c   : > { %650 = vmatprep.subr.bf16.mxu1 %v684_v10 }
  0x1f   : > { %652 = vmatpush3.bf16.msra.mxu1 %v651_v41 }
  0x20   : > { %653 = vmatprep.subr.bf16.mxu1 %v684_v10 }
  0x23   : > { %655 = vmatpush3.bf16.msra.mxu1 %v654_v44 }
  0x24   : > { %656 = vmatprep.subr.bf16.mxu1 %v684_v10 }
  0x27   : > { %658 = vmatpush3.bf16.msra.mxu1 %v657_v47 }
  0x9f   : > { %v280_v2 = vpop.xlane.xlu0 %279 }
  0xa0   : > { %v282_v3 = vmul.f32 0.03125, %v280_v2 }
  0xa2   : > { %v283_v4 = vsub.f32 %v743_v0, %v282_v3 }
  0xa4   : > { %v284_v5 = vmul.f32 %v283_v4, %v283_v4 }
  0xa6   : > { %v285_v6 = vsel %vm277_vm0, %v284_v5, 0.0 }
  0xa7   : > { %286 = vadd.xlane.f32.xlu0 %v285_v6 }
 0x134   : > { %v287_v15 = vpop.xlane.xlu0 %286 }
 0x135   : > { %v288_v16 = vmul.f32 0.03125, %v287_v15 }
 0x137   : > { %v289_v17 = vadd.f32 1e-05, %v288_v16 }
 0x139   : > { %670 = vrsqrt.f32 %v289_v17 }
 0x143   : > { %v671_v18 = vpop.eup %670 }
 0x144   : > { %v291_v20 = vmul.f32 %v671_v18, %v283_v4 }
 0x146   : > { %v298_v22 = vmul.f32 %v553_v19, %v291_v20 }
 0x148   : > { %v305_v23 = vadd.f32 %v554_v21, %v298_v22 }
 0x14a   : > { %592 = vmatmul.mubr.msk.f32.vlgmr.msra.gmra.mrb[0].mxu0 %vm277_vm0, %v305_v23 }
 0x21d   : > { %v386_v49 = vpop.f32.mrb[0].mxu0 }
 0x21e   : > { %v387_v50 = vadd.f32 %v555_v48, %v386_v49  ;;  %v593_v51 = vpop.f32.mrb[1].mxu0 }
 0x220   : > { %v557_v52 = vmul.f32 -1.702, %v387_v50 }
 0x222   : > { %v392_v53 = vmul.f32 1.442695, %v557_v52 }
 0x224   : > { %672 = vpow2.f32 %v392_v53 }
 0x22e   : > { %v673_v54 = vpop.eup %672 }
 0x22f   : > { %v394_v55 = vadd.f32 1.0, %v673_v54 }
 0x231   : > { %674 = vrcp.f32 %v394_v55 }
 0x23b   : > { %v675_v56 = vpop.eup %674 }
 0x23c   : > { %v397_v57 = vmul.f32 %v675_v56, %v387_v50 }
 0x23e   : > { %627 = vmatmul.mubr.f32.vlgmr.msra.gmra.mrb[0].mxu1 %v397_v57 }
 0x311   : > { %v487_v59 = vpop.f32.mrb[0].mxu1 }
 0x312   : > { %v488_v60 = vadd.f32 %v558_v58, %v487_v59  ;;  %v628_v61 = vpop.f32.mrb[1].mxu1 }
 0x314   : > { %v491_v62 = vadd.f32 %v488_v60, %v743_v0 }
 0x316   : > { %492 = vst.msk [vmem:[%s273_s17] sm:$0xff] %vm277_vm0, %v491_v62 }
 0x317 PF: > { %s17_s24 = sadd.s32 1, %s682_s24  }
 0x318   : > { %p14_p4 = scmp.ge.s32.totalorder %s17_s24, 4  }
 0x31a   :  { %16 = sbr.rel (!%p14_p4) target bundleno = 1 (0x1), region = 78 }

// kernel: text_encoder_forward.9
= control target key start
LH: loop header
LB: loop body
LE: loop exit
PB: predicated region body
PF: predicated region fallthrough
CT: control target
= control target key end

     0   :  { %s683_s0 = inlined_call_operand.vmem [shape: s32[2], index: 0, kind: input, shape index: {}]   ;;  %s684_s1 = inlined_call_operand.vmem [shape: f32[2,8,32], index: 1, kind: input, shape index: {}]   ;;  %s685_s2 = inlined_call_operand.vmem [shape: f32[1,32], index: 2, kind: input, shape index: {}]   ;;  %s686_s3 = inlined_call_operand.vmem [shape: f32[1,32], index: 3, kind: input, shape index: {}]   ;;  %s687_s4 = inlined_call_operand.vmem [shape: f32[32,32], index: 4, kind: input, shape index: {}]   ;;  %s688_s5 = inlined_call_operand.hbm [shape: f32[2,1,32], index: 5, kind: output, shape index: {}]  }
   0x1   :  { %s10_s20 = sshll.u32 %s683_s0, 4  ;;  %s11_s20 = int_to_ptr.vmem [resolvable:$true] %s10_s20 }
   0x2   :  { %s445_s21 = scalar_lea.vmem %s11_s20, 16  ;;  %p450_p1 = scmp.lt.s32.totalorder %s11_s20, %s11_s20 }
   0x3   :  { %p446_p0 = scmp.ne.s32.totalorder %s11_s20, %s445_s21  ;;  %p451_p2 = scmp.lt.s32.totalorder %s445_s21, %s445_s21 }
   0x5   :  { %p452_p3 = por %p451_p2, %p450_p1 }
   0x7   :  { %p453_p4 = pnand %p452_p3, %p446_p0 }
   0x9   :  { %456 = shalt.err (!%p453_p4)  }
   0xa   :  { %s523_s22 = smov [#allocation3]  }
   0xb   :  { %13 = dma.vmem_to_smem %s11_s20, 16, %s523_s22, [#allocation2] }
   0xc   :  { %501 = dma.done.wait [#allocation2], 16 }
   0xd   :  { %502 = vsyncadd [#allocation2], 4294967280 }
   0xe   :  { %15 = sfence }
   0xf   :  { %16 = vsyncpa [#allocation5], 0 }
  0x10   :  { %18 = vsyncpa [#allocation5 + $0x1], 0  ;;  %s561_s23 = smov 0   ;;  %s563_s24 = smov 0  }
  0x11   :  { %s565_s0 = smov 0   ;;  %s567_s25 = smov 0  }
  0x12 LB: > { %s582_s26 = sadd.s32 4294967295, %s521_s25   ;;  %s369_s27 = sadd.s32 4294967294, %s521_s25   ;;  %s521_s25 = sphi %s567_s25, %s694_s25   ;;  %s517_s0 = sphi %s565_s0, %s693_s0   ;;  %s513_s24 = sphi %s563_s24, %s692_s24   ;;  %s509_s23 = sphi %s561_s23, %s691_s23  }
  0x13   : > { %s586_s28 = sadd.s32 1, %s521_s25   ;;  %s120_s29 = sadd.s32 1, %s517_s0 }
  0x14   : > { %s117_s30 = ssub.s32 %s521_s25, %s586_s28  ;;  %p130_p5 = scmp.ne.s32.totalorder %s517_s0, %s513_s24 }
  0x15   : > { %p118_p6 = scmp.eq.s32.totalorder %s117_s30, 0  ;;  %p131_p7 = scmp.eq.s32.totalorder %s582_s26, 1 }
  0x16   : > { %p136_p8 = scmp.ne.s32.totalorder %s513_s24, %s509_s23  ;;  %p137_p9 = scmp.eq.s32.totalorder %s369_s27, 1 }
  0x17   : > { %s597_s6 = scalar_select %p118_p6, %s517_s0, %s120_s29  }
  0x18   : > { %p599_p10 = por %p131_p7, %p130_p5  ;;  %p603_p11 = por %p137_p9, %p136_p8 }
  0x19   : > { %p372_p12 = scmp.ge.s32.totalorder %s521_s25, 1  ;;  %p171_p13 = scmp.lt.s32.totalorder %s521_s25, 3 }
  0x1b   : > { %p172_p0 = pnand %p372_p12, %p171_p13 }
  0x1c   : > { %p195_p1 = scmp.lt.s32.totalorder (!%p172_p0), %s582_s26, 1  ;;  %s199_s9 = sld [smem:[#allocation3 + %s582_s26]] (!%p172_p0)  ;;  %vm204_vm0 = vcmask (!%p172_p0), 253952   ;;  %v221_v7 = vld [vmem:[%s687_s4] sm:$0xff] (!%p172_p0)  ;;  %v222_v8 = vld [vmem:[%s687_s4 + $0x8] sm:$0xff] (!%p172_p0)  ;;  %v223_v9 = vld [vmem:[%s687_s4 + $0x10] sm:$0xff] (!%p172_p0) }
  0x1d   : > { %175 = sbr.rel (%p172_p0) target bundleno = 581 (0x245), region = 36  ;;  %v524_v10 = vmov (!%p172_p0), 0.0|0.0   ;;  %v395_v11 = vpack.c.bf16 (!%p172_p0), %v222_v8, %v221_v7  ;;  %v224_v12 = vld [vmem:[%s687_s4 + $0x18] sm:$0xff] (!%p172_p0)  ;;  %vm525_vm1 = vmmov (!%p172_p0), 0   ;;  %v526_v13 = vmov (!%p172_p0), 0.0   ;;  %s375_s12 = sshll.u32 (!%p172_p0), %s582_s26, 4 }
  0x1e   : > { %394 = vmatprep.subr.bf16.mxu0 (!%p172_p0), %v524_v10  ;;  %391 = vmatprep.mubr.msk.f32.mxu0 (!%p172_p0), %vm525_vm1, %v526_v13  ;;  %v398_v14 = vpack.c.bf16 (!%p172_p0), %v224_v12, %v223_v9  ;;  %v202_v19 = vld [vmem:[%s685_s2] sm:$0x1] (!%p172_p0)  ;;  %vm225_vm2 = vcmask (!%p172_p0), 261120   ;;  %s640_s17 = scalar_lea.hbm (!%p172_p0), %s688_s5, %s375_s12 }
  0x1f   : > { %396 = vmatpush3.bf16.msra.mxu0 (!%p172_p0), %v395_v11  ;;  %v203_v21 = vld [vmem:[%s686_s3] sm:$0x1] (!%p172_p0) }
  0x20   : > { %397 = vmatprep.subr.bf16.mxu0 (!%p172_p0), %v524_v10 }
  0x23   : > { %399 = vmatpush3.bf16.msra.mxu0 (!%p172_p0), %v398_v14 }
  0x24   : > { %s196_s10 = scalar_select %p195_p1, %s582_s26, 1 }
  0x25   : > { %s527_s26 = smov [#allocation4]  }
  0x26   : > { %s373_s11 = sshll.u32 %s196_s10, 3  ;;  %s461_s20 = sshll.u32 %s527_s26, 4  ;;  %s462_s20 = int_to_ptr.vmem [resolvable:$false] %s461_s20 }
  0x27   : > { %s198_s14 = scalar_lea.vmem %s684_s1, %s373_s11  ;;  %s193_s11 = sand.u32 1, %s513_s24  }
  0x28   : > { %s200_s15 = scalar_lea.vmem %s198_s14, %s199_s9  ;;  %s194_s13 = scalar_lea.vmem [#allocation4], %s193_s11 }
  0x29   : > { %v201_v0 = vld [vmem:[%s200_s15] sm:$0x1]  ;;  %s313_s14 = sshll.u32 %s194_s13, 4  ;;  %s301_s18 = scalar_lea.sflag [#allocation5], %s193_s11  ;;  %s642_s14 = int_to_ptr.vmem [resolvable:$true] %s313_s14 }
  0x2a   : > { %v205_v1 = vsel %vm204_vm0, %v201_v0, 0.0  ;;  %s457_s19 = scalar_lea.vmem %s642_s14, 16  ;;  %s463_s21 = scalar_lea.vmem %s462_s20, 32 }
  0x2b   : > { %206 = vadd.xlane.f32.xlu0 %v205_v1  ;;  %p458_p2 = scmp.ne.s32.totalorder %s642_s14, %s457_s19  ;;  %p464_p5 = scmp.lt.s32.totalorder %s642_s14, %s462_s20 }
  0x2c   : > { %p465_p6 = scmp.lt.s32.totalorder %s463_s21, %s457_s19 }
  0x2d   : > { %p459_p3 = pnand %p458_p2, %p599_p10 }
  0x2e   : > { %p466_p7 = por %p465_p6, %p464_p5 }
  0x2f   : > { %p460_p4 = pneg %p459_p3 }
  0x31   : > { %p467_p8 = pnand %p466_p7, %p460_p4 }
  0xb8   : > { %v207_v2 = vpop.xlane.xlu0 %206 }
  0xb9   : > { %v209_v3 = vmul.f32 0.03125, %v207_v2 }
  0xbb   : > { %v210_v4 = vsub.f32 %v201_v0, %v209_v3 }
  0xbd   : > { %v211_v5 = vmul.f32 %v210_v4, %v210_v4 }
  0xbf   : > { %v212_v6 = vsel %vm204_vm0, %v211_v5, 0.0 }
  0xc0   : > { %213 = vadd.xlane.f32.xlu0 %v212_v6 }
 0x14d   : > { %v214_v15 = vpop.xlane.xlu0 %213 }
 0x14e   : > { %v215_v16 = vmul.f32 0.03125, %v214_v15 }
 0x150   : > { %v216_v17 = vadd.f32 1e-05, %v215_v16 }
 0x152   : > { %443 = vrsqrt.f32 %v216_v17 }
 0x15c   : > { %v444_v18 = vpop.eup %443 }
 0x15d   : > { %v218_v20 = vmul.f32 %v444_v18, %v210_v4 }
 0x15f   : > { %v219_v22 = vmul.f32 %v218_v20, %v202_v19 }
 0x161   : > { %v220_v23 = vadd.f32 %v219_v22, %v203_v21 }
 0x163   : > { %392 = vmatmul.mubr.msk.f32.vlgmr.msra.gmra.mrb[0].mxu0 %vm225_vm2, %v220_v23 }
 0x236   : > { %v295_v24 = vpop.f32.mrb[0].mxu0 }
 0x237   : > { %299 = vst.msk [vmem:[%s194_s13] sm:$0x1] %vm204_vm0, %v295_v24  ;;  %v393_v25 = vpop.f32.mrb[1].mxu0 }
 0x238   : > { %470 = shalt.err (!%p467_p8)
}
 0x239   : > { %s471_s22 = scalar_lea.hbm %s640_s17, 16  ;;  %s475_s30 = scalar_lea.hbm %s688_s5, 32 }
 0x23a   : > { %p472_p9 = scmp.ne.s32.totalorder %s640_s17, %s471_s22  ;;  %p476_p0 = scmp.lt.u32.totalorder %s640_s17, %s688_s5 }
 0x23b   : > { %p477_p1 = scmp.lt.u32.totalorder %s475_s30, %s471_s22  ;;  %p479_p3 = scmp.lt.u32.totalorder %s471_s22, %s640_s17 }
 0x23c   : > { %p473_p12 = pnand %p472_p9, %p599_p10 }
 0x23d   : > { %p478_p2 = por %p477_p1, %p476_p0 }
 0x23e   : > { %p474_p13 = pneg %p473_p12 }
 0x23f   : > { %p480_p4 = por %p479_p3, %p478_p2 }
 0x241   : > { %p481_p5 = pnand %p480_p4, %p474_p13 }
 0x243   : > { %484 = shalt.err (!%p481_p5)
}
 0x244   : > { %400 = dma.vmem_to_hbm [thread:$0]  (%p599_p10), %s642_s14, 16, %s640_s17, %s301_s18  }
 0x245 PF: > { %p406_p6 = scmp.ge.s32.totalorder %s521_s25, 2  ;;  %s325_s11 = sand.u32 1, %s509_s23  }
 0x246   : > { %s326_s12 = scalar_lea.sflag [#allocation5], %s325_s11 }
 0x247   : > { %p403_p7 = pnand %p406_p6, %p603_p11 }
 0x249   : > { %504 = dma.done.wait (!%p403_p7), %s326_s12, 16  }
 0x24a   : > { %506 = vsyncadd (!%p403_p7), %s326_s12, 4294967280  ;;  %p21_p8 = scmp.ge.s32.totalorder %s586_s28, 4   ;;  %s691_s23 = smov %s513_s24 }
 0x24b   : > { %s692_s24 = smov %s517_s0  ;;  %s693_s0 = smov %s597_s6 }
 0x24c   : > { %s694_s25 = smov %s586_s28  ;;  %23 = sbr.rel (!%p21_p8) target bundleno = 18 (0x12), region = 72 }
 0x253   :  { %330 = vsyncpa [#allocation5], 1 }
 0x254   :  { %332 = vsyncpa [#allocation5 + $0x1], 1 }

// kernel: text_encoder_forward.5
= control target key start
LH: loop header
LB: loop body
LE: loop exit
PB: predicated region body
PF: predicated region fallthrough
CT: control target
= control target key end

     0   :  { %s2004_s27 = smov 0   ;;  %s2138_s0 = inlined_call_operand.vmem [shape: f32[2,8,32], index: 0, kind: input, shape index: {}]   ;;  %s2139_s1 = inlined_call_operand.vmem [shape: f32[1,32], index: 1, kind: input, shape index: {}]   ;;  %s2140_s2 = inlined_call_operand.vmem [shape: f32[1,32], index: 2, kind: input, shape index: {}]   ;;  %s2141_s3 = inlined_call_operand.vmem [shape: f32[32,96], index: 3, kind: input, shape index: {}]   ;;  %s2142_s4 = inlined_call_operand.vmem [shape: f32[1,96], index: 4, kind: input, shape index: {}]   ;;  %s2143_s5 = inlined_call_operand.vmem [shape: f32[32,32], index: 5, kind: input, shape index: {}]   ;;  %s2144_s6 = inlined_call_operand.vmem [shape: f32[1,32], index: 6, kind: input, shape index: {}]   ;;  %s2145_s7 = inlined_call_operand.vmem [shape: f32[8,8], index: 7, kind: input, shape index: {}]   ;;  %s2146_s8 = inlined_call_operand.vmem [shape: f32[2,8,32], index: 8, kind: output, shape index: {}]  }
   0x1 LB: > { %s1770_s28 = sadd.s32 4294967295, %s1944_s27   ;;  %p1774_p0 = scmp.ge.s32.totalorder %s1944_s27, 1  ;;  %s1944_s27 = sphi %s2004_s27, %s18_s27  }
   0x2   : > { %p261_p1 = scmp.lt.s32.totalorder %s1944_s27, 3 }
   0x4   : > { %p262_p2 = pnand %p1774_p0, %p261_p1 }
   0x5   : > { %p293_p3 = scmp.lt.s32.totalorder (!%p262_p2), %s1770_s28, 1  ;;  %vm304_vm0 = vcmask (!%p262_p2), 261120   ;;  %v333_v7 = vld [vmem:[%s2141_s3] sm:$0xff] (!%p262_p2)  ;;  %v334_v8 = vld [vmem:[%s2141_s3 + $0x8] sm:$0xff] (!%p262_p2)  ;;  %v335_v9 = vld [vmem:[%s2141_s3 + $0x10] sm:$0xff] (!%p262_p2)  ;;  %v1946_v10 = vmov (!%p262_p2), 0.0|0.0  }
   0x6   : > { %265 = sbr.rel (%p262_p2) target bundleno = 2169 (0x879), region = 52  ;;  %1887 = vmatprep.subr.bf16.mxu0 (!%p262_p2), %v1946_v10  ;;  %v1888_v11 = vpack.c.bf16 (!%p262_p2), %v334_v8, %v333_v7  ;;  %v336_v12 = vld [vmem:[%s2141_s3 + $0x18] sm:$0xff] (!%p262_p2)  ;;  %vm1947_vm1 = vmmov (!%p262_p2), 0   ;;  %v1948_v13 = vmov (!%p262_p2), 0.0   ;;  %v1777_v19 = vld [vmem:[%s2139_s1] ss:$0 sm:$0xff] (!%p262_p2) }
   0x7   : > { %1833 = vmatprep.mubr.msk.f32.mxu0 (!%p262_p2), %vm1947_vm1, %v1948_v13  ;;  %1841 = vmatprep.subr.mxu1 (!%p262_p2), %v1948_v13  ;;  %v1891_v14 = vpack.c.bf16 (!%p262_p2), %v336_v12, %v335_v9  ;;  %v1778_v21 = vld [vmem:[%s2140_s2] ss:$0 sm:$0xff] (!%p262_p2)  ;;  %s1949_s25 = smov (!%p262_p2), 104   ;;  %s1950_s26 = smov (!%p262_p2), 120   ;;  %vm564_vm2 = vcmask (!%p262_p2), 64512   ;;  %vm1627_vm3 = vcmask (!%p262_p2), 130048  }
   0x8   : > { %1843 = vmatprep.mubr.msk.f32.mxu1 (!%p262_p2), %vm1947_vm1, %v1948_v13  ;;  %1889 = vmatpush3.bf16.msra.mxu0 (!%p262_p2), %v1888_v11  ;;  %v1779_v24 = vld [vmem:[%s2142_s4] ss:$0 sm:$0xff] (!%p262_p2)  ;;  %s1951_s30 = smov (!%p262_p2), 112   ;;  %s1952_s9 = smov (!%p262_p2), 96   ;;  %vm1629_vm4 = vcmask (!%p262_p2), 195584  }
   0x9   : > { %1890 = vmatprep.subr.bf16.mxu0 (!%p262_p2), %v1946_v10  ;;  %v857_v40 = vld [vmem:[%s2145_s7] sm:$0xff] (!%p262_p2)  ;;  %s1953_s12 = smov (!%p262_p2), 64   ;;  %s1956_s21 = smov (!%p262_p2), 16  }
   0xa   : > { %s1957_s22 = smov (!%p262_p2), 8   ;;  %s1958_s23 = smov (!%p262_p2), 24  }
   0xc   : > { %1892 = vmatpush3.bf16.msra.mxu0 (!%p262_p2), %v1891_v14 }
   0xd   : > { %s2148_s28 = smov (!%p293_p3, %s1770_s28), 1  ;;  %1836 = vmatprep.subr.mxu0 %v1948_v13 }
   0xe   : > { %s1775_s29 = sshll.u32 %s2148_s28, 3 }
   0xf   : > { %s296_s10 = scalar_lea.vmem %s2138_s0, %s1775_s29 }
  0x10   : > { %v2020_v0 = vld [vmem:[%s296_s10] sm:$0xff] }
  0x11   : > { %v305_v1 = vsel %vm304_vm0, %v2020_v0, 0.0 }
  0x12   : > { %306 = vadd.xlane.f32.xlu0 %v305_v1 }
  0x9f   : > { %v307_v2 = vpop.xlane.xlu0 %306 }
  0xa0   : > { %v309_v3 = vmul.f32 0.03125, %v307_v2 }
  0xa2   : > { %v310_v4 = vsub.f32 %v2020_v0, %v309_v3 }
  0xa4   : > { %v311_v5 = vmul.f32 %v310_v4, %v310_v4 }
  0xa6   : > { %v312_v6 = vsel %vm304_vm0, %v311_v5, 0.0 }
  0xa7   : > { %313 = vadd.xlane.f32.xlu0 %v312_v6 }
 0x134   : > { %v314_v15 = vpop.xlane.xlu0 %313 }
 0x135   : > { %v315_v16 = vmul.f32 0.03125, %v314_v15 }
 0x137   : > { %v316_v17 = vadd.f32 1e-05, %v315_v16 }
 0x139   : > { %1920 = vrsqrt.f32 %v316_v17 }
 0x143   : > { %v1921_v18 = vpop.eup %1920 }
 0x144   : > { %v318_v20 = vmul.f32 %v1921_v18, %v310_v4 }
 0x146   : > { %v325_v22 = vmul.f32 %v1777_v19, %v318_v20 }
 0x148   : > { %v332_v23 = vadd.f32 %v1778_v21, %v325_v22 }
 0x14a   : > { %1834 = vmatmul.mubr.msk.f32.vlgmr.msra.gmra.mrb[0].mxu0 %vm304_vm0, %v332_v23 }
 0x14b   : > { %1838 = vmatprep.mubr.msk.f32.mxu0 %vm1947_vm1, %v1948_v13 }
 0x21d   : > { %v413_v25 = vpop.f32.mrb[0].mxu0 }
 0x21e   : > { %v2058_v26 = vadd.f32 %v1779_v24, %v413_v25  ;;  %v1835_v27 = vpop.f32.mrb[1].mxu0 }
 0x220   : > { %422 = vrot.lane.b32.xlu0 %v2058_v26, %s1949_s25  ;;  %418 = vrot.lane.b32.xlu1 %v2058_v26, %s1950_s26 }
 0x224   : > { %420 = vrot.lane.b32.xlu1 %v2058_v26, %s1951_s30 }
 0x228   : > { %424 = vrot.lane.b32.xlu1 %v2058_v26, %s1952_s9 }
 0x292   : > { %v419_v28 = vpop.permute.xlu1 %418  ;;  %v423_v30 = vpop.permute.xlu0 %422 }
 0x293   : > { %426 = vrot.lane.b32.xlu1 %v419_v28, %s1952_s9 }
 0x296   : > { %v421_v29 = vpop.permute.xlu1 %420 }
 0x297   : > { %428 = vrot.lane.b32.xlu1 %v421_v29, %s1952_s9 }
 0x29a   : > { %v425_v31 = vpop.permute.xlu1 %424 }
 0x29b   : > { %430 = vrot.lane.b32.xlu1 %v423_v30, %s1952_s9  ;;  %s300_s9 = scalar_lea.vmem %s2146_s8, %s1775_s29 }
 0x2c4   : > { %436 = vxpose.xlu1.b32.start.end [1/1] (short) (narrow) %v425_v31, 8 }
 0x305   : > { %v427_v32 = vpop.permute.xlu1 %426 }
 0x306   : > { %468 = vxpose.xlu0.b32.start.end [1/1] (short) (narrow) %v427_v32, 8 }
 0x309   : > { %v429_v33 = vpop.permute.xlu1 %428 }
 0x30a   : > { %500 = vxpose.xlu0.b32.start.end [1/1] (short) (narrow) %v429_v33, 8 }
 0x30d   : > { %v431_v34 = vpop.permute.xlu1 %430 }
 0x30e   : > { %532 = vxpose.xlu0.b32.start.end [1/1] (short) (narrow) %v431_v34, 8 }
 0x344   : > { %v452_v35 = vpop.trf.xlu1 }
 0x345   : > { %1837 = vmatpush3.msra.mxu0 %v452_v35 }
 0x346   : > { %1839 = vmatmul.mubr.msk.f32.vlgmr.msra.gmra.mrb[2].mxu0 %vm564_vm2, %v2058_v26  ;;  %1851 = vmatprep.subr.mxu0 %v1948_v13 }
 0x347   : > { %1853 = vmatprep.mubr.msk.f32.mxu0 %vm1947_vm1, %v1948_v13 }
 0x386   : > { %v484_v36 = vpop.trf.xlu0 }
 0x387   : > { %1842 = vmatpush3.msra.mxu1 %v484_v36 }
 0x388   : > { %1844 = vmatmul.mubr.msk.f32.vlgmr.msra.gmra.mrb[0].mxu1 %vm564_vm2, %v419_v28  ;;  %1846 = vmatprep.subr.mxu1 %v1948_v13 }
 0x389   : > { %1848 = vmatprep.mubr.msk.f32.mxu1 %vm1947_vm1, %v1948_v13 }
 0x38a   : > { %v516_v37 = vpop.trf.xlu0 }
 0x38b   : > { %1847 = vmatpush3.msra.mxu1 %v516_v37 }
 0x38c   : > { %1849 = vmatmul.mubr.msk.f32.vlgmr.msra.gmra.mrb[2].mxu1 %vm564_vm2, %v421_v29  ;;  %1856 = vmatprep.subr.mxu1 %v1948_v13 }
 0x38d   : > { %1858 = vmatprep.mubr.msk.f32.mxu1 %vm1947_vm1, %v1948_v13 }
 0x38e   : > { %v548_v38 = vpop.trf.xlu0 }
 0x38f   : > { %1852 = vmatpush3.msra.mxu0 %v548_v38 }
 0x390   : > { %1854 = vmatmul.mubr.msk.f32.vlgmr.msra.gmra.mrb[4].mxu0 %vm564_vm2, %v423_v30  ;;  %1861 = vmatprep.subr.mxu0 %v1948_v13 }
 0x391   : > { %1863 = vmatprep.mubr.msk.f32.mxu0 %vm1947_vm1, %v1948_v13 }
 0x419   : > { %v633_v39 = vpop.f32.mrb[2].mxu0 }
 0x41a   : > { %v853_v41 = vmul.f32 0.35355338, %v633_v39  ;;  %v1840_v42 = vpop.f32.mrb[3].mxu0 }
 0x41c   : > { %v858_v43 = vadd.f32 %v857_v40, %v853_v41 }
 0x41e   : > { %v862_v44 = vsel %vm564_vm2, %v858_v43, -inf }
 0x41f   : > { %863 = vmax.xlane.f32.xlu1 %v862_v44 }
 0x45b   : > { %v705_v45 = vpop.f32.mrb[0].mxu1 }
 0x45c   : > { %v854_v46 = vmul.f32 0.35355338, %v705_v45  ;;  %v1845_v47 = vpop.f32.mrb[1].mxu1 }
 0x45d   : > { %v1631_v47 = vld [vmem:[%s2143_s5] sm:$0xff] }
 0x45e   : > { %v859_v48 = vadd.f32 %v857_v40, %v854_v46 }
 0x45f   : > { %v777_v49 = vpop.f32.mrb[2].mxu1 }
 0x460   : > { %v855_v50 = vmul.f32 0.35355338, %v777_v49  ;;  %v1850_v51 = vpop.f32.mrb[3].mxu1  ;;  %v865_v52 = vsel %vm564_vm2, %v859_v48, -inf }
 0x461   : > { %866 = vmax.xlane.f32.xlu0 %v865_v52  ;;  %v1483_v52 = vlaneseq }
 0x462   : > { %v860_v53 = vadd.f32 %v857_v40, %v855_v50  ;;  %v1954_v50 = vmov 1983009808  }
 0x463   : > { %v849_v54 = vpop.f32.mrb[4].mxu0  ;;  %v1481_v51 = vunpack.c.l.s4 %v1954_v50 }
 0x464   : > { %v856_v55 = vmul.f32 0.35355338, %v849_v54  ;;  %v1855_v56 = vpop.f32.mrb[5].mxu0  ;;  %v868_v57 = vsel %vm564_vm2, %v860_v53, -inf  ;;  %v1955_v54 = vmov 1934713408  }
 0x465   : > { %869 = vmax.xlane.f32.xlu1 %v868_v57  ;;  %v1482_v56 = vunpack.c.0.s8 %v1481_v51  ;;  %v1484_v57 = vshrl.u32 %v1483_v52, 7 }
 0x466   : > { %v861_v58 = vadd.f32 %v857_v40, %v856_v55  ;;  %v1513_v55 = vunpack.c.l.s4 %v1955_v54 }
 0x468   : > { %v871_v59 = vsel %vm564_vm2, %v861_v58, -inf }
 0x469   : > { %872 = vmax.xlane.f32.xlu1 %v871_v59  ;;  %v1514_v59 = vunpack.c.0.s8 %v1513_v55 }
 0x477   : > { %908 = vrot.lane.b32.xlu0 %v419_v28, %s1953_s12 }
 0x47a   : > { %906 = vrot.lane.b32.xlu1 %v2058_v26, %s1953_s12 }
 0x47e   : > { %910 = vrot.lane.b32.xlu1 %v421_v29, %s1953_s12 }
 0x482   : > { %912 = vrot.lane.b32.xlu1 %v423_v30, %s1953_s12 }
 0x4ac   : > { %v864_v60 = vpop.xlane.xlu1 %863 }
 0x4ad   : > { %v874_v61 = vsub.f32 %v858_v43, %v864_v60  ;;  %v1485_v60 = vsub.s32 %v1482_v56, %v1484_v57 }
 0x4af   : > { %v878_v62 = vmul.f32 1.442695, %v874_v61 }
 0x4b1   : > { %1922 = vpow2.f32 %v878_v62 }
 0x4bb   : > { %v1923_v63 = vpop.eup %1922 }
 0x4bc   : > { %v886_v1 = vsel %vm564_vm2, %v1923_v63, 0.0 }
 0x4bd   : > { %887 = vadd.xlane.f32.xlu0 %v886_v1 }
 0x4ee   : > { %v867_v2 = vpop.xlane.xlu0 %866 }
 0x4ef   : > { %v875_v3 = vsub.f32 %v859_v48, %v867_v2 }
 0x4f1   : > { %v880_v4 = vmul.f32 1.442695, %v875_v3  ;;  %v1517_v3 = vsub.s32 %v1514_v59, %v1484_v57 }
 0x4f2   : > { %v870_v5 = vpop.xlane.xlu1 %869  ;;  %v909_v20 = vpop.permute.xlu0 %908 }
 0x4f3   : > { %1924 = vpow2.f32 %v880_v4  ;;  %v876_v6 = vsub.f32 %v860_v53, %v870_v5 }
 0x4f5   : > { %v882_v9 = vmul.f32 1.442695, %v876_v6 }
 0x4f6   : > { %v873_v7 = vpop.xlane.xlu1 %872 }
 0x4f7   : > { %v877_v8 = vsub.f32 %v861_v58, %v873_v7 }
 0x4f9   : > { %v884_v11 = vmul.f32 1.442695, %v877_v8 }
 0x4fa   : > { %v907_v19 = vpop.permute.xlu1 %906 }
 0x4fb   : > { %1926 = vpow2.f32 %v884_v11 }
 0x4fc   : > { %1928 = vpow2.f32 %v882_v9 }
 0x4fd   : > { %v1925_v12 = vpop.eup %1924 }
 0x4fe   : > { %v889_v14 = vsel %vm564_vm2, %v1925_v12, 0.0  ;;  %v911_v21 = vpop.permute.xlu1 %910 }
 0x4ff   : > { %890 = vadd.xlane.f32.xlu1 %v889_v14  ;;  %v1634_v14 = vld [vmem:[%s2143_s5 + $0x18] sm:$0xff] }
 0x502   : > { %v913_v22 = vpop.permute.xlu1 %912 }
 0x505   : > { %v1927_v15 = vpop.eup %1926 }
 0x506   : > { %v895_v16 = vsel %vm564_vm2, %v1927_v15, 0.0  ;;  %v1929_v17 = vpop.eup %1928 }
 0x507   : > { %896 = vadd.xlane.f32.xlu0 %v895_v16  ;;  %v892_v18 = vsel %vm564_vm2, %v1929_v17, 0.0 }
 0x50b   : > { %893 = vadd.xlane.f32.xlu0 %v892_v18 }
 0x532   : > { %918 = vxpose.xlu1.b32.start.end [1/1] (short) (narrow) %v907_v19, 8 }
 0x538   : > { %950 = vxpose.xlu0.b32.start.end [1/1] (short) (narrow) %v909_v20, 8 }
 0x53c   : > { %982 = vxpose.xlu0.b32.start.end [1/1] (short) (narrow) %v911_v21, 8 }
 0x540   : > { %1014 = vxpose.xlu0.b32.start.end [1/1] (short) (narrow) %v913_v22, 8 }
 0x54a   : > { %v888_v23 = vpop.xlane.xlu0 %887 }
 0x54b   : > { %1930 = vrcp.f32 %v888_v23 }
 0x555   : > { %v1931_v24 = vpop.eup %1930 }
 0x556   : > { %v899_v25 = vmul.f32 %v1931_v24, %v1923_v63 }
 0x558   : > { %1857 = vmatpush3.xpose.msk.msra.mxu1 %vm564_vm2, %v899_v25 }
 0x559   : > { %1866 = vmatprep.subr.mxu1 %v1948_v13 }
 0x58c   : > { %v891_v26 = vpop.xlane.xlu1 %890 }
 0x58d   : > { %1932 = vrcp.f32 %v891_v26 }
 0x594   : > { %v897_v29 = vpop.xlane.xlu0 %896 }
 0x597   : > { %v1933_v27 = vpop.eup %1932 }
 0x598   : > { %v901_v28 = vmul.f32 %v1933_v27, %v1925_v12  ;;  %v894_v30 = vpop.xlane.xlu0 %893  ;;  %v1633_v12 = vld [vmem:[%s2143_s5 + $0x10] sm:$0xff] }
 0x599   : > { %1934 = vrcp.f32 %v894_v30  ;;  %v1897_v19 = vpack.c.bf16 %v1634_v14, %v1633_v12 }
 0x59a   : > { %1862 = vmatpush3.xpose.msk.msra.mxu0 %vm564_vm2, %v901_v28  ;;  %1936 = vrcp.f32 %v897_v29 }
 0x59b   : > { %1871 = vmatprep.subr.mxu0 %v1948_v13 }
 0x5a3   : > { %v1935_v31 = vpop.eup %1934 }
 0x5a4   : > { %v903_v32 = vmul.f32 %v1935_v31, %v1929_v17  ;;  %v1937_v34 = vpop.eup %1936 }
 0x5a5   : > { %v905_v35 = vmul.f32 %v1937_v34, %v1927_v15 }
 0x5b2   : > { %v934_v33 = vpop.trf.xlu1 }
 0x5b3   : > { %1859 = vmatmul.mubr.msk.f32.vlgmr.msra.gmra.mrb[4].mxu1 %vm564_vm2, %v934_v33 }
 0x5b4   : > { %1867 = vmatpush3.xpose.msk.msra.mxu1 %vm564_vm2, %v903_v32  ;;  %1868 = vmatprep.mubr.msk.f32.mxu1 %vm1947_vm1, %v1948_v13 }
 0x5b5   : > { %1893 = vmatprep.subr.bf16.mxu1 %v1946_v10 }
 0x5b8   : > { %v966_v36 = vpop.trf.xlu0 }
 0x5b9   : > { %1864 = vmatmul.mubr.msk.f32.vlgmr.msra.gmra.mrb[6].mxu0 %vm564_vm2, %v966_v36 }
 0x5ba   : > { %1872 = vmatpush3.xpose.msk.msra.mxu0 %vm564_vm2, %v905_v35  ;;  %1873 = vmatprep.mubr.msk.f32.mxu0 %vm1947_vm1, %v1948_v13 }
 0x5bc   : > { %v998_v37 = vpop.trf.xlu0 }
 0x5bd   : > { %1869 = vmatmul.mubr.msk.f32.vlgmr.msra.gmra.mrb[6].mxu1 %vm564_vm2, %v998_v37 }
 0x5be   : > { %1884 = vmatprep.mubr.msk.f32.mxu1 %vm1947_vm1, %v1948_v13  ;;  %v1632_v13 = vld [vmem:[%s2143_s5 + $0x8] sm:$0xff] }
 0x5bf   : > { %v1894_v48 = vpack.c.bf16 %v1632_v13, %v1631_v47 }
 0x5c0   : > { %v1030_v38 = vpop.trf.xlu0 }
 0x5c1   : > { %1874 = vmatmul.mubr.msk.f32.vlgmr.msra.gmra.mrb[8].mxu0 %vm564_vm2, %v1030_v38  ;;  %1895 = vmatpush3.bf16.msra.mxu1 %v1894_v48 }
 0x5c2   : > { %1896 = vmatprep.subr.bf16.mxu1 %v1946_v10 }
 0x5c5   : > { %1898 = vmatpush3.bf16.msra.mxu1 %v1897_v19 }
 0x686   : > { %v1118_v39 = vpop.f32.mrb[4].mxu1 }
 0x687   : > { %1350 = vxpose.xlu1.b32.start.end [1/1] (short) (narrow) %v1118_v39, 8  ;;  %v1860_v40 = vpop.f32.mrb[5].mxu1 }
 0x68c   : > { %v1194_v41 = vpop.f32.mrb[6].mxu0 }
 0x68d   : > { %v1865_v42 = vpop.f32.mrb[7].mxu0  ;;  %1382 = vxpose.xlu0.b32.start.end [1/1] (short) (narrow) %v1194_v41, 8 }
 0x690   : > { %v1270_v43 = vpop.f32.mrb[6].mxu1 }
 0x691   : > { %v1870_v44 = vpop.f32.mrb[7].mxu1  ;;  %1414 = vxpose.xlu1.b32.start.end [1/1] (short) (narrow) %v1270_v43, 8 }
 0x694   : > { %v1346_v45 = vpop.f32.mrb[8].mxu0 }
 0x695   : > { %1446 = vxpose.xlu0.b32.start.end [1/1] (short) (narrow) %v1346_v45, 8  ;;  %v1875_v46 = vpop.f32.mrb[9].mxu0 }
 0x696   : > { %v1795_v46 = vld [vmem:[%s2144_s6] ss:$0 sm:$0xff] }
 0x707   : > { %v1366_v49 = vpop.trf.xlu1 }
 0x70d   : > { %v1398_v53 = vpop.trf.xlu0 }
 0x711   : > { %v1430_v58 = vpop.trf.xlu1 }
 0x712   : > { %v1478_v61 = vcombine.low %v1366_v49, %v1430_v58  ;;  %v1479_v62 = vcombine.high %v1366_v49, %v1430_v58 }
 0x714   : > { %v1486_v4 = vrot.slane %v1478_v61, %v1485_v60  ;;  %v1493_v10 = vrot.slane %v1479_v62, %v1485_v60 }
 0x715   : > { %v1462_v63 = vpop.trf.xlu0 }
 0x716   : > { %v1494_v1 = vcombine.low %v1398_v53, %v1462_v63  ;;  %v1495_v2 = vcombine.high %v1398_v53, %v1462_v63 }
 0x718   : > { %v1502_v5 = vrot.slane %v1494_v1, %v1485_v60  ;;  %v1509_v6 = vrot.slane %v1495_v2, %v1485_v60 }
 0x71a   : > { %v1510_v7 = vcombine.low %v1486_v4, %v1502_v5  ;;  %v1511_v8 = vcombine.high %v1486_v4, %v1502_v5  ;;  %v1526_v9 = vcombine.low %v1493_v10, %v1509_v6  ;;  %v1527_v11 = vcombine.high %v1493_v10, %v1509_v6 }
 0x71c   : > { %v1518_v15 = vrot.slane %v1510_v7, %v1517_v3  ;;  %v1525_v16 = vrot.slane %v1511_v8, %v1517_v3  ;;  %v1534_v17 = vrot.slane %v1526_v9, %v1517_v3  ;;  %v1541_v18 = vrot.slane %v1527_v11, %v1517_v3 }
 0x71e   : > { %v1546_v20 = vcombine.low %v1518_v15, %v1525_v16  ;;  %v1793_v21 = vcombine.high %v1518_v15, %v1525_v16  ;;  %v1562_v22 = vcombine.low %v1534_v17, %v1541_v18  ;;  %v1794_v23 = vcombine.high %v1534_v17, %v1541_v18 }
 0x720   : > { %v1553_v24 = vrot.slane %v1546_v20, %v1485_v60  ;;  %v1561_v25 = vrot.slane %v1793_v21, %v1485_v60  ;;  %v1569_v26 = vrot.slane %v1562_v22, %v1485_v60  ;;  %v1577_v27 = vrot.slane %v1794_v23, %v1485_v60 }
 0x722   : > { %v1579_v28 = vcombine.high %v1553_v24, %v1561_v25  ;;  %v1595_v29 = vcombine.high %v1569_v26, %v1577_v27  ;;  %v1578_v30 = vcombine.low %v1553_v24, %v1561_v25  ;;  %v1594_v31 = vcombine.low %v1569_v26, %v1577_v27 }
 0x724   : > { %v1593_v32 = vrot.slane %v1579_v28, %v1517_v3  ;;  %v1609_v33 = vrot.slane %v1595_v29, %v1517_v3  ;;  %v1586_v34 = vrot.slane %v1578_v30, %v1517_v3  ;;  %v1602_v35 = vrot.slane %v1594_v31, %v1517_v3 }
 0x726   : > { %v1612_v36 = vcombine.low %v1593_v32, %v1609_v33  ;;  %v1611_v37 = vcombine.high %v1586_v34, %v1602_v35  ;;  %v1610_v38 = vcombine.low %v1586_v34, %v1602_v35  ;;  %v1613_v39 = vcombine.high %v1593_v32, %v1609_v33 }
 0x728   : > { %1619 = vrot.lane.b32.xlu0 %v1612_v36, %s1956_s21  ;;  %1615 = vrot.lane.b32.xlu1 %v1611_v37, %s1957_s22 }
 0x72c   : > { %1623 = vrot.lane.b32.xlu1 %v1613_v39, %s1958_s23 }
 0x79a   : > { %v1616_v40 = vpop.permute.xlu1 %1615  ;;  %v1620_v41 = vpop.permute.xlu0 %1619 }
 0x79b   : > { %v1626_v42 = vsel %vm564_vm2, %v1610_v38, %v1616_v40 }
 0x79c   : > { %v1628_v44 = vsel %vm1627_vm3, %v1626_v42, %v1620_v41 }
 0x79e   : > { %v1624_v43 = vpop.permute.xlu1 %1623 }
 0x79f   : > { %v1630_v45 = vsel %vm1629_vm4, %v1628_v44, %v1624_v43 }
 0x7a0   : > { %1885 = vmatmul.mubr.msk.f32.vlgmr.msra.gmra.mrb[8].mxu1 %vm304_vm0, %v1630_v45 }
 0x873   : > { %v1711_v47 = vpop.f32.mrb[8].mxu1 }
 0x874   : > { %v1712_v13 = vadd.f32 %v1795_v46, %v1711_v47  ;;  %v1886_v48 = vpop.f32.mrb[9].mxu1 }
 0x876   : > { %v1715_v49 = vadd.f32 %v1712_v13, %v2020_v0 }
 0x878   : > { %1716 = vst.msk [vmem:[%s300_s9] sm:$0xff] %vm304_vm0, %v1715_v49 }
 0x879 PF: > { %s18_s27 = sadd.s32 1, %s1944_s27  }
 0x87a   : > { %p15_p4 = scmp.ge.s32.totalorder %s18_s27, 4  }
 0x87c   :  { %17 = sbr.rel (!%p15_p4) target bundleno = 1 (0x1), region = 82 }

</bundles_post_ra>
